<compile_context>
chip_gen: v5e
topology: v5e:2x2
jax: 0.10.0
libtpu: 0.0.40
codegen_flags: <defaults>
</compile_context>

<pallas_src>
import jax
import jax.numpy as jnp
from jax.experimental import pallas as pl
from jax.experimental.pallas import tpu as pltpu


def _seq2seq_kernel(inp2d_ref, last_in_ref, tgt_ref, mask_ref,
                    wih_e_ref, whh_e_ref, bi_e_ref, bh_e_ref,
                    w1_ref, whf_ref, bhf_ref, wih_d_ref, bi_d_ref,
                    out_ref, gi_enc_ref):
    f32, bf16 = jnp.float32, jnp.bfloat16
    Bp, H = last_in_ref.shape
    Lt, _, OW = out_ref.shape
    GE = gi_enc_ref.shape[1]               # encoder packed-gate width (3H rounded to 128)
    WD = whf_ref.shape[1]                  # decoder fused width: [mix | r | z | n] (4H -> 128)
    Lin = gi_enc_ref.shape[0] // Bp

    # ---------------- encoder GRU (zero initial hidden) ----------------
    # Hoisted input-side projection: ONE batched bf16 matmul, off the serial chain,
    # staged in VMEM scratch so it does not pin vregs across the unrolled recurrence.
    gi_all = jnp.dot(inp2d_ref[...], wih_e_ref[...],
                     preferred_element_type=f32) + bi_e_ref[...]
    gi_enc_ref[...] = gi_all

    bh_e_b = jnp.broadcast_to(bh_e_ref[...], (Bp, GE))     # hoisted bias broadcast

    def enc_gates(gi, gh, h):
        # gi/gh: [Bp, GE], gates packed at lane offsets 0, H, 2H.
        s = jax.nn.sigmoid(gi + gh)                         # one EUP pass; padded lanes unused
        r = s[:, 0:H]
        z = s[:, H:2 * H]
        n = jnp.tanh(gi[:, 2 * H:3 * H] + r * gh[:, 2 * H:3 * H])
        return (1.0 - z) * n + z * h                        # only lanes 0:H consumed

    # peeled t = 0: h == 0, so the hidden-side contribution is just its bias (no matmul)
    h = enc_gates(gi_enc_ref[pl.ds(0, Bp), :], bh_e_b, jnp.zeros((Bp, H), f32))
    for t in range(1, Lin):                                 # fully unrolled (Lin small)
        gh = jnp.dot(h.astype(bf16), whh_e_ref[...],
                     preferred_element_type=f32) + bh_e_b
        h = enc_gates(gi_enc_ref[pl.ds(t * Bp, Bp), :], gh, h)

    # ---------------- decoder loop ----------------
    out_ref[0] = jnp.zeros((Bp, OW), f32)                   # outputs[0] stays zero
    dec_in = tgt_ref[0]                                     # decoder_input = target[0]
    temp = last_in_ref[...]                                 # temp = input[-1]

    bhf_b = jnp.broadcast_to(bhf_ref[...], (Bp, WD))        # hoisted bias broadcasts
    bi_d_b = jnp.broadcast_to(bi_d_ref[...], (Bp, WD))
    lane_pad = jnp.zeros((Bp, OW - H), f32) if OW > H else None

    for t in range(1, Lt):                                  # fully unrolled (Lt small)
        # one fused h-LHS matmul: lanes [0:H] = attention hidden-half (+ folded att bias),
        # lanes [H:4H] = decoder GRU hidden-side gates r/z/n (+ b_hh_n at the n slot).
        hcat = jnp.dot(h.astype(bf16), whf_ref[...],
                       preferred_element_type=f32) + bhf_b
        # embedding Linear folded into the attention mix-half:
        #   tanh([emb, h] @ Watt^T + b)  ==  tanh(x @ W1 + h @ Wb + b')
        att = jnp.tanh(jnp.dot(dec_in.astype(bf16), w1_ref[...],
                               preferred_element_type=f32) + hcat[:, 0:H])
        # decoder GRU single step (output == new hidden); gates packed at lanes H/2H/3H
        # so gi aligns with hcat without any extra lane rotate.
        gi = jnp.dot(att.astype(bf16), wih_d_ref[...],
                     preferred_element_type=f32) + bi_d_b
        s = jax.nn.sigmoid(gi + hcat)                       # one EUP pass; lanes 0:H unused
        r = s[:, H:2 * H]
        z = s[:, 2 * H:3 * H]
        n = jnp.tanh(gi[:, 3 * H:4 * H] + r * hcat[:, 3 * H:4 * H])
        h_new = (1.0 - z) * n + z * h

        out_t = h_new + temp                                # outputs[t], valid lanes 0:H
        if lane_pad is not None:                            # lane-dense, unmasked full-tile store
            out_ref[t] = jnp.concatenate([out_t, lane_pad], axis=-1)
        else:
            out_ref[t] = out_t
        new_in = jnp.where(mask_ref[t] > 0, tgt_ref[t], out_t)
        h = h_new
        dec_in = new_in
        temp = new_in                                       # decoder_input / temp merged


def _round_up(x, m):
    return ((x + m - 1) // m) * m


def seq2seq_forward(input_tensor, target_tensor, teacher_mask, params):
    """input/target: [seq, batch, feat] f32; teacher_mask: [target_len] int;
    returns [target_len, batch, hidden] f32."""
    Lin, B, D = input_tensor.shape
    Lt, Bt, Dt = target_tensor.shape
    H = params["whh_e"].shape[1]
    if D != H or Dt != H:
        raise ValueError(
            "Seq2Seq arithmetic (outputs[t] = decoder_out + temp, decoder_input = "
            "outputs[t]) requires input_size == hidden_size == target feature size.")
    if Bt != B or teacher_mask.shape[0] != Lt:
        raise ValueError("target/teacher_mask shapes inconsistent with input.")

    f32, bf16 = jnp.float32, jnp.bfloat16
    Bp = _round_up(max(B, 8), 8)          # pad batch to full sublanes
    GE = _round_up(3 * H, 128)            # encoder packed-gate lane width
    WD = _round_up(4 * H, 128)            # decoder fused width: [mix | r | z | n]
    OW = _round_up(H, 128)                # lane-dense output width

    def gru_w_packed(w):                  # PyTorch GRU weight [3H, IN] -> [IN, GE], gates at 0/H/2H
        wt = jnp.asarray(w, f32).T
        return jnp.pad(wt, ((0, 0), (0, GE - 3 * H)))

    def chunks(b):
        b = jnp.asarray(b, f32)
        return b[0:H], b[H:2 * H], b[2 * H:3 * H]

    zeros_h = jnp.zeros((H,), f32)

    # --- encoder GRU weights (compact gate packing; r/z biases folded onto the input side) ---
    wih_e = gru_w_packed(params["wih_e"]).astype(bf16)
    whh_e = gru_w_packed(params["whh_e"]).astype(bf16)
    eir, eiz, ein = chunks(params["bih_e"])
    ehr, ehz, ehn = chunks(params["bhh_e"])
    bi_e = jnp.pad(jnp.concatenate([eir + ehr, eiz + ehz, ein]),
                   (0, GE - 3 * H)).reshape(1, GE)
    bh_e = jnp.pad(jnp.concatenate([zeros_h, zeros_h, ehn]),
                   (0, GE - 3 * H)).reshape(1, GE)

    # --- attention: tanh([emb, h] @ Watt^T + b_att), emb = x @ Wemb^T + b_emb
    #   = tanh(x @ (Wemb^T @ Wa) + h @ Wb + (b_emb @ Wa + b_att))
    wemb_t = jnp.asarray(params["wemb"], f32).T            # [D, H]
    watt_t = jnp.asarray(params["watt"], f32).T            # [2H, H]
    wa, wb = watt_t[0:H], watt_t[H:2 * H]                  # mix-half, hidden-half
    w1 = jnp.dot(wemb_t, wa).astype(bf16)                  # [D, H]
    batt_f = (jnp.dot(jnp.asarray(params["bemb"], f32), wa)
              + jnp.asarray(params["batt"], f32))          # [H]

    # --- decoder GRU weights, fused with the attention hidden-half: lanes [mix|r|z|n] ---
    wih_d_t = jnp.asarray(params["wih_d"], f32).T          # [H, 3H]
    whh_d_t = jnp.asarray(params["whh_d"], f32).T          # [H, 3H]
    whf = jnp.pad(jnp.concatenate([wb, whh_d_t], axis=1),
                  ((0, 0), (0, WD - 4 * H))).astype(bf16)  # [H, WD]
    wih_d = jnp.pad(jnp.concatenate([jnp.zeros((H, H), f32), wih_d_t], axis=1),
                    ((0, 0), (0, WD - 4 * H))).astype(bf16)
    dir_, diz, din = chunks(params["bih_d"])
    dhr, dhz, dhn = chunks(params["bhh_d"])
    bhf = jnp.pad(jnp.concatenate([batt_f, zeros_h, zeros_h, dhn]),
                  (0, WD - 4 * H)).reshape(1, WD)
    bi_d = jnp.pad(jnp.concatenate([zeros_h, dir_ + dhr, diz + dhz, din]),
                   (0, WD - 4 * H)).reshape(1, WD)

    # --- inputs (batch padded to Bp sublanes; padded rows are discarded afterwards) ---
    inp = jnp.pad(jnp.asarray(input_tensor, f32), ((0, 0), (0, Bp - B), (0, 0)))
    tgt = jnp.pad(jnp.asarray(target_tensor, f32), ((0, 0), (0, Bp - B), (0, 0)))
    last_in = inp[Lin - 1]                                  # temp init = input[-1], [Bp, D] f32
    inp2d = inp.reshape(Lin * Bp, D).astype(bf16)           # flat rows for the hoisted projection

    args = (
        inp2d, last_in, tgt, jnp.asarray(teacher_mask, jnp.int32),
        wih_e, whh_e, bi_e, bh_e,
        w1, whf, bhf, wih_d, bi_d,
    )

    vmem = pl.BlockSpec(memory_space=pltpu.MemorySpace.VMEM)
    smem = pl.BlockSpec(memory_space=pltpu.MemorySpace.SMEM)
    in_specs = [vmem, vmem, vmem, smem] + [vmem] * 9

    out_full = pl.pallas_call(
        _seq2seq_kernel,
        out_shape=jax.ShapeDtypeStruct((Lt, Bp, OW), jnp.float32),
        in_specs=in_specs,
        out_specs=vmem,
        scratch_shapes=[pltpu.VMEM((Lin * Bp, GE), jnp.float32)],
        # No vmem_limit override: total resident footprint is <1 MiB on all generations.
    )(*args)

    return out_full[:, :B, :H]


def init_params(key, input_size, hidden_size):
    """Deterministic synthetic parameters matching the PyTorch module's shapes."""
    D, H = input_size, hidden_size
    ks = jax.random.split(key, 12)

    def u(k, shape, fan_in):
        bound = 1.0 / (fan_in ** 0.5)
        return jax.random.uniform(k, shape, jnp.float32, -bound, bound)

    return {
        # encoder GRU(input_size, hidden)
        "wih_e": u(ks[0], (3 * H, D), H), "whh_e": u(ks[1], (3 * H, H), H),
        "bih_e": u(ks[2], (3 * H,), H),   "bhh_e": u(ks[3], (3 * H,), H),
        # decoder embedding Linear(input_size, hidden)
        "wemb": u(ks[4], (H, D), D),      "bemb": u(ks[5], (H,), D),
        # attention output Linear(2*hidden, hidden)
        "watt": u(ks[6], (H, 2 * H), 2 * H), "batt": u(ks[7], (H,), 2 * H),
        # decoder GRU(hidden, hidden)
        "wih_d": u(ks[8], (3 * H, H), H), "whh_d": u(ks[9], (3 * H, H), H),
        "bih_d": u(ks[10], (3 * H,), H),  "bhh_d": u(ks[11], (3 * H,), H),
    }


if __name__ == "__main__":
    key = jax.random.PRNGKey(0)
    k_par, k_in, k_tgt, k_tf = jax.random.split(key, 4)

    B = 2          # batch
    H = 32         # hidden_size
    D = H          # input_size (module's arithmetic requires input_size == hidden_size)
    Lin = 8        # input seq_len
    Lt = 8         # target seq_len

    params = init_params(k_par, D, H)
    input_tensor = jax.random.normal(k_in, (Lin, B, D), jnp.float32)
    target_tensor = jax.random.normal(k_tgt, (Lt, B, D), jnp.float32)
    # deterministic replacement for random.random() < teacher_forcing_ratio (0.5)
    teacher_mask = (jax.random.uniform(k_tf, (Lt,)) < 0.5).astype(jnp.int32)

    out = seq2seq_forward(input_tensor, target_tensor, teacher_mask, params)
    out = jax.block_until_ready(out)
    assert out.shape == (Lt, B, H) and out.dtype == jnp.float32
    print("KERNEL_OK")
</pallas_src>

<mosaic_0001>
module attributes {stable_mosaic.version = 11 : i64} {
  func.func @_seq2seq_kernel(%arg0: memref<64x32xbf16, #tpu.memory_space<vmem>>, %arg1: memref<8x32xf32, #tpu.memory_space<vmem>>, %arg2: memref<8x8x32xf32, #tpu.memory_space<vmem>>, %arg3: memref<8xi32, #tpu.memory_space<smem>>, %arg4: memref<32x128xbf16, #tpu.memory_space<vmem>>, %arg5: memref<32x128xbf16, #tpu.memory_space<vmem>>, %arg6: memref<1x128xf32, #tpu.memory_space<vmem>>, %arg7: memref<1x128xf32, #tpu.memory_space<vmem>>, %arg8: memref<32x32xbf16, #tpu.memory_space<vmem>>, %arg9: memref<32x128xbf16, #tpu.memory_space<vmem>>, %arg10: memref<1x128xf32, #tpu.memory_space<vmem>>, %arg11: memref<32x128xbf16, #tpu.memory_space<vmem>>, %arg12: memref<1x128xf32, #tpu.memory_space<vmem>>, %arg13: memref<8x8x128xf32, #tpu.memory_space<vmem>>, %arg14: memref<64x128xf32, #tpu.memory_space<vmem>>) attributes {dimension_semantics = [], scalar_prefetch = 0 : i64, scratch_operands = 1 : i64, tpu.core_type = #tpu.core_type<tc>} {
    %c0 = arith.constant 0 : index
    %c0_0 = arith.constant 0 : index
    %0 = vector.load %arg0[%c0, %c0_0] : memref<64x32xbf16, #tpu.memory_space<vmem>>, vector<64x32xbf16>
    %c0_1 = arith.constant 0 : index
    %c0_2 = arith.constant 0 : index
    %1 = vector.load %arg4[%c0_1, %c0_2] : memref<32x128xbf16, #tpu.memory_space<vmem>>, vector<32x128xbf16>
    %cst = arith.constant dense<0.000000e+00> : vector<64x128xf32>
    %2 = tpu.matmul %0, %1, %cst {dimension_numbers = #tpu.dot_dimension_numbers<[1], [0], [0], [1], [0, 0, 1, 1], [], []>} : vector<64x32xbf16>, vector<32x128xbf16>, vector<64x128xf32> -> vector<64x128xf32>
    %c0_3 = arith.constant 0 : index
    %c0_4 = arith.constant 0 : index
    %3 = vector.load %arg6[%c0_3, %c0_4] : memref<1x128xf32, #tpu.memory_space<vmem>>, vector<1x128xf32>
    %4 = vector.broadcast %3 : vector<1x128xf32> to vector<64x128xf32>
    %5 = arith.addf %2, %4 : vector<64x128xf32>
    %c0_5 = arith.constant 0 : index
    %c0_6 = arith.constant 0 : index
    %6 = vector.load %arg14[%c0_5, %c0_6] : memref<64x128xf32, #tpu.memory_space<vmem>>, vector<64x128xf32>
    tpu.vector_store %arg14[%c0_5, %c0_6], %5 {strides = array<i32>} : memref<64x128xf32, #tpu.memory_space<vmem>>, vector<64x128xf32>,
    %c0_7 = arith.constant 0 : index
    %c0_8 = arith.constant 0 : index
    %7 = vector.load %arg7[%c0_7, %c0_8] : memref<1x128xf32, #tpu.memory_space<vmem>>, vector<1x128xf32>
    %8 = vector.shape_cast %7 : vector<1x128xf32> to vector<1x128xf32>
    %9 = vector.broadcast %8 : vector<1x128xf32> to vector<8x128xf32>
    %c0_9 = arith.constant 0 : index
    %c0_10 = arith.constant 0 : index
    %10 = vector.load %arg14[%c0_9, %c0_10] : memref<64x128xf32, #tpu.memory_space<vmem>>, vector<8x128xf32>
    %cst_11 = arith.constant 0.000000e+00 : f32
    %11 = vector.broadcast %cst_11 : f32 to vector<8x32xf32>
    %12 = arith.addf %10, %9 : vector<8x128xf32>
    %13 = arith.negf %12 : vector<8x128xf32>
    %14 = math.exp %13 : vector<8x128xf32>
    %cst_12 = arith.constant 1.000000e+00 : f32
    %15 = vector.broadcast %cst_12 : f32 to vector<8x128xf32>
    %16 = arith.addf %15, %14 : vector<8x128xf32>
    %17 = arith.divf %15, %16 : vector<8x128xf32>
    %18 = vector.extract_strided_slice %17 {offsets = [0, 0], sizes = [8, 32], strides = [1, 1]} : vector<8x128xf32> to vector<8x32xf32>
    %19 = vector.extract_strided_slice %17 {offsets = [0, 32], sizes = [8, 32], strides = [1, 1]} : vector<8x128xf32> to vector<8x32xf32>
    %20 = vector.extract_strided_slice %10 {offsets = [0, 64], sizes = [8, 32], strides = [1, 1]} : vector<8x128xf32> to vector<8x32xf32>
    %21 = vector.extract_strided_slice %9 {offsets = [0, 64], sizes = [8, 32], strides = [1, 1]} : vector<8x128xf32> to vector<8x32xf32>
    %22 = arith.mulf %18, %21 : vector<8x32xf32>
    %23 = arith.addf %20, %22 : vector<8x32xf32>
    %24 = math.tanh %23 : vector<8x32xf32>
    %cst_13 = arith.constant 1.000000e+00 : f32
    %25 = vector.broadcast %cst_13 : f32 to vector<8x32xf32>
    %26 = arith.subf %25, %19 : vector<8x32xf32>
    %27 = arith.mulf %26, %24 : vector<8x32xf32>
    %28 = arith.mulf %19, %11 : vector<8x32xf32>
    %29 = arith.addf %27, %28 : vector<8x32xf32>
    %30 = arith.truncf %29 : vector<8x32xf32> to vector<8x32xbf16>
    %c0_14 = arith.constant 0 : index
    %c0_15 = arith.constant 0 : index
    %31 = vector.load %arg5[%c0_14, %c0_15] : memref<32x128xbf16, #tpu.memory_space<vmem>>, vector<32x128xbf16>
    %cst_16 = arith.constant dense<0.000000e+00> : vector<8x128xf32>
    %32 = tpu.matmul %30, %31, %cst_16 {dimension_numbers = #tpu.dot_dimension_numbers<[1], [0], [0], [1], [0, 0, 1, 1], [], []>} : vector<8x32xbf16>, vector<32x128xbf16>, vector<8x128xf32> -> vector<8x128xf32>
    %33 = arith.addf %32, %9 : vector<8x128xf32>
    %c8 = arith.constant 8 : index
    %c0_17 = arith.constant 0 : index
    %34 = vector.load %arg14[%c8, %c0_17] : memref<64x128xf32, #tpu.memory_space<vmem>>, vector<8x128xf32>
    %35 = arith.addf %34, %33 : vector<8x128xf32>
    %36 = arith.negf %35 : vector<8x128xf32>
    %37 = math.exp %36 : vector<8x128xf32>
    %cst_18 = arith.constant 1.000000e+00 : f32
    %38 = vector.broadcast %cst_18 : f32 to vector<8x128xf32>
    %39 = arith.addf %38, %37 : vector<8x128xf32>
    %40 = arith.divf %38, %39 : vector<8x128xf32>
    %41 = vector.extract_strided_slice %40 {offsets = [0, 0], sizes = [8, 32], strides = [1, 1]} : vector<8x128xf32> to vector<8x32xf32>
    %42 = vector.extract_strided_slice %40 {offsets = [0, 32], sizes = [8, 32], strides = [1, 1]} : vector<8x128xf32> to vector<8x32xf32>
    %43 = vector.extract_strided_slice %34 {offsets = [0, 64], sizes = [8, 32], strides = [1, 1]} : vector<8x128xf32> to vector<8x32xf32>
    %44 = vector.extract_strided_slice %33 {offsets = [0, 64], sizes = [8, 32], strides = [1, 1]} : vector<8x128xf32> to vector<8x32xf32>
    %45 = arith.mulf %41, %44 : vector<8x32xf32>
    %46 = arith.addf %43, %45 : vector<8x32xf32>
    %47 = math.tanh %46 : vector<8x32xf32>
    %cst_19 = arith.constant 1.000000e+00 : f32
    %48 = vector.broadcast %cst_19 : f32 to vector<8x32xf32>
    %49 = arith.subf %48, %42 : vector<8x32xf32>
    %50 = arith.mulf %49, %47 : vector<8x32xf32>
    %51 = arith.mulf %42, %29 : vector<8x32xf32>
    %52 = arith.addf %50, %51 : vector<8x32xf32>
    %53 = arith.truncf %52 : vector<8x32xf32> to vector<8x32xbf16>
    %c0_20 = arith.constant 0 : index
    %c0_21 = arith.constant 0 : index
    %54 = vector.load %arg5[%c0_20, %c0_21] : memref<32x128xbf16, #tpu.memory_space<vmem>>, vector<32x128xbf16>
    %cst_22 = arith.constant dense<0.000000e+00> : vector<8x128xf32>
    %55 = tpu.matmul %53, %54, %cst_22 {dimension_numbers = #tpu.dot_dimension_numbers<[1], [0], [0], [1], [0, 0, 1, 1], [], []>} : vector<8x32xbf16>, vector<32x128xbf16>, vector<8x128xf32> -> vector<8x128xf32>
    %56 = arith.addf %55, %9 : vector<8x128xf32>
    %c16 = arith.constant 16 : index
    %c0_23 = arith.constant 0 : index
    %57 = vector.load %arg14[%c16, %c0_23] : memref<64x128xf32, #tpu.memory_space<vmem>>, vector<8x128xf32>
    %58 = arith.addf %57, %56 : vector<8x128xf32>
    %59 = arith.negf %58 : vector<8x128xf32>
    %60 = math.exp %59 : vector<8x128xf32>
    %cst_24 = arith.constant 1.000000e+00 : f32
    %61 = vector.broadcast %cst_24 : f32 to vector<8x128xf32>
    %62 = arith.addf %61, %60 : vector<8x128xf32>
    %63 = arith.divf %61, %62 : vector<8x128xf32>
    %64 = vector.extract_strided_slice %63 {offsets = [0, 0], sizes = [8, 32], strides = [1, 1]} : vector<8x128xf32> to vector<8x32xf32>
    %65 = vector.extract_strided_slice %63 {offsets = [0, 32], sizes = [8, 32], strides = [1, 1]} : vector<8x128xf32> to vector<8x32xf32>
    %66 = vector.extract_strided_slice %57 {offsets = [0, 64], sizes = [8, 32], strides = [1, 1]} : vector<8x128xf32> to vector<8x32xf32>
    %67 = vector.extract_strided_slice %56 {offsets = [0, 64], sizes = [8, 32], strides = [1, 1]} : vector<8x128xf32> to vector<8x32xf32>
    %68 = arith.mulf %64, %67 : vector<8x32xf32>
    %69 = arith.addf %66, %68 : vector<8x32xf32>
    %70 = math.tanh %69 : vector<8x32xf32>
    %cst_25 = arith.constant 1.000000e+00 : f32
    %71 = vector.broadcast %cst_25 : f32 to vector<8x32xf32>
    %72 = arith.subf %71, %65 : vector<8x32xf32>
    %73 = arith.mulf %72, %70 : vector<8x32xf32>
    %74 = arith.mulf %65, %52 : vector<8x32xf32>
    %75 = arith.addf %73, %74 : vector<8x32xf32>
    %76 = arith.truncf %75 : vector<8x32xf32> to vector<8x32xbf16>
    %c0_26 = arith.constant 0 : index
    %c0_27 = arith.constant 0 : index
    %77 = vector.load %arg5[%c0_26, %c0_27] : memref<32x128xbf16, #tpu.memory_space<vmem>>, vector<32x128xbf16>
    %cst_28 = arith.constant dense<0.000000e+00> : vector<8x128xf32>
    %78 = tpu.matmul %76, %77, %cst_28 {dimension_numbers = #tpu.dot_dimension_numbers<[1], [0], [0], [1], [0, 0, 1, 1], [], []>} : vector<8x32xbf16>, vector<32x128xbf16>, vector<8x128xf32> -> vector<8x128xf32>
    %79 = arith.addf %78, %9 : vector<8x128xf32>
    %c24 = arith.constant 24 : index
    %c0_29 = arith.constant 0 : index
    %80 = vector.load %arg14[%c24, %c0_29] : memref<64x128xf32, #tpu.memory_space<vmem>>, vector<8x128xf32>
    %81 = arith.addf %80, %79 : vector<8x128xf32>
    %82 = arith.negf %81 : vector<8x128xf32>
    %83 = math.exp %82 : vector<8x128xf32>
    %cst_30 = arith.constant 1.000000e+00 : f32
    %84 = vector.broadcast %cst_30 : f32 to vector<8x128xf32>
    %85 = arith.addf %84, %83 : vector<8x128xf32>
    %86 = arith.divf %84, %85 : vector<8x128xf32>
    %87 = vector.extract_strided_slice %86 {offsets = [0, 0], sizes = [8, 32], strides = [1, 1]} : vector<8x128xf32> to vector<8x32xf32>
    %88 = vector.extract_strided_slice %86 {offsets = [0, 32], sizes = [8, 32], strides = [1, 1]} : vector<8x128xf32> to vector<8x32xf32>
    %89 = vector.extract_strided_slice %80 {offsets = [0, 64], sizes = [8, 32], strides = [1, 1]} : vector<8x128xf32> to vector<8x32xf32>
    %90 = vector.extract_strided_slice %79 {offsets = [0, 64], sizes = [8, 32], strides = [1, 1]} : vector<8x128xf32> to vector<8x32xf32>
    %91 = arith.mulf %87, %90 : vector<8x32xf32>
    %92 = arith.addf %89, %91 : vector<8x32xf32>
    %93 = math.tanh %92 : vector<8x32xf32>
    %cst_31 = arith.constant 1.000000e+00 : f32
    %94 = vector.broadcast %cst_31 : f32 to vector<8x32xf32>
    %95 = arith.subf %94, %88 : vector<8x32xf32>
    %96 = arith.mulf %95, %93 : vector<8x32xf32>
    %97 = arith.mulf %88, %75 : vector<8x32xf32>
    %98 = arith.addf %96, %97 : vector<8x32xf32>
    %99 = arith.truncf %98 : vector<8x32xf32> to vector<8x32xbf16>
    %c0_32 = arith.constant 0 : index
    %c0_33 = arith.constant 0 : index
    %100 = vector.load %arg5[%c0_32, %c0_33] : memref<32x128xbf16, #tpu.memory_space<vmem>>, vector<32x128xbf16>
    %cst_34 = arith.constant dense<0.000000e+00> : vector<8x128xf32>
    %101 = tpu.matmul %99, %100, %cst_34 {dimension_numbers = #tpu.dot_dimension_numbers<[1], [0], [0], [1], [0, 0, 1, 1], [], []>} : vector<8x32xbf16>, vector<32x128xbf16>, vector<8x128xf32> -> vector<8x128xf32>
    %102 = arith.addf %101, %9 : vector<8x128xf32>
    %c32 = arith.constant 32 : index
    %c0_35 = arith.constant 0 : index
    %103 = vector.load %arg14[%c32, %c0_35] : memref<64x128xf32, #tpu.memory_space<vmem>>, vector<8x128xf32>
    %104 = arith.addf %103, %102 : vector<8x128xf32>
    %105 = arith.negf %104 : vector<8x128xf32>
    %106 = math.exp %105 : vector<8x128xf32>
    %cst_36 = arith.constant 1.000000e+00 : f32
    %107 = vector.broadcast %cst_36 : f32 to vector<8x128xf32>
    %108 = arith.addf %107, %106 : vector<8x128xf32>
    %109 = arith.divf %107, %108 : vector<8x128xf32>
    %110 = vector.extract_strided_slice %109 {offsets = [0, 0], sizes = [8, 32], strides = [1, 1]} : vector<8x128xf32> to vector<8x32xf32>
    %111 = vector.extract_strided_slice %109 {offsets = [0, 32], sizes = [8, 32], strides = [1, 1]} : vector<8x128xf32> to vector<8x32xf32>
    %112 = vector.extract_strided_slice %103 {offsets = [0, 64], sizes = [8, 32], strides = [1, 1]} : vector<8x128xf32> to vector<8x32xf32>
    %113 = vector.extract_strided_slice %102 {offsets = [0, 64], sizes = [8, 32], strides = [1, 1]} : vector<8x128xf32> to vector<8x32xf32>
    %114 = arith.mulf %110, %113 : vector<8x32xf32>
    %115 = arith.addf %112, %114 : vector<8x32xf32>
    %116 = math.tanh %115 : vector<8x32xf32>
    %cst_37 = arith.constant 1.000000e+00 : f32
    %117 = vector.broadcast %cst_37 : f32 to vector<8x32xf32>
    %118 = arith.subf %117, %111 : vector<8x32xf32>
    %119 = arith.mulf %118, %116 : vector<8x32xf32>
    %120 = arith.mulf %111, %98 : vector<8x32xf32>
    %121 = arith.addf %119, %120 : vector<8x32xf32>
    %122 = arith.truncf %121 : vector<8x32xf32> to vector<8x32xbf16>
    %c0_38 = arith.constant 0 : index
    %c0_39 = arith.constant 0 : index
    %123 = vector.load %arg5[%c0_38, %c0_39] : memref<32x128xbf16, #tpu.memory_space<vmem>>, vector<32x128xbf16>
    %cst_40 = arith.constant dense<0.000000e+00> : vector<8x128xf32>
    %124 = tpu.matmul %122, %123, %cst_40 {dimension_numbers = #tpu.dot_dimension_numbers<[1], [0], [0], [1], [0, 0, 1, 1], [], []>} : vector<8x32xbf16>, vector<32x128xbf16>, vector<8x128xf32> -> vector<8x128xf32>
    %125 = arith.addf %124, %9 : vector<8x128xf32>
    %c40 = arith.constant 40 : index
    %c0_41 = arith.constant 0 : index
    %126 = vector.load %arg14[%c40, %c0_41] : memref<64x128xf32, #tpu.memory_space<vmem>>, vector<8x128xf32>
    %127 = arith.addf %126, %125 : vector<8x128xf32>
    %128 = arith.negf %127 : vector<8x128xf32>
    %129 = math.exp %128 : vector<8x128xf32>
    %cst_42 = arith.constant 1.000000e+00 : f32
    %130 = vector.broadcast %cst_42 : f32 to vector<8x128xf32>
    %131 = arith.addf %130, %129 : vector<8x128xf32>
    %132 = arith.divf %130, %131 : vector<8x128xf32>
    %133 = vector.extract_strided_slice %132 {offsets = [0, 0], sizes = [8, 32], strides = [1, 1]} : vector<8x128xf32> to vector<8x32xf32>
    %134 = vector.extract_strided_slice %132 {offsets = [0, 32], sizes = [8, 32], strides = [1, 1]} : vector<8x128xf32> to vector<8x32xf32>
    %135 = vector.extract_strided_slice %126 {offsets = [0, 64], sizes = [8, 32], strides = [1, 1]} : vector<8x128xf32> to vector<8x32xf32>
    %136 = vector.extract_strided_slice %125 {offsets = [0, 64], sizes = [8, 32], strides = [1, 1]} : vector<8x128xf32> to vector<8x32xf32>
    %137 = arith.mulf %133, %136 : vector<8x32xf32>
    %138 = arith.addf %135, %137 : vector<8x32xf32>
    %139 = math.tanh %138 : vector<8x32xf32>
    %cst_43 = arith.constant 1.000000e+00 : f32
    %140 = vector.broadcast %cst_43 : f32 to vector<8x32xf32>
    %141 = arith.subf %140, %134 : vector<8x32xf32>
    %142 = arith.mulf %141, %139 : vector<8x32xf32>
    %143 = arith.mulf %134, %121 : vector<8x32xf32>
    %144 = arith.addf %142, %143 : vector<8x32xf32>
    %145 = arith.truncf %144 : vector<8x32xf32> to vector<8x32xbf16>
    %c0_44 = arith.constant 0 : index
    %c0_45 = arith.constant 0 : index
    %146 = vector.load %arg5[%c0_44, %c0_45] : memref<32x128xbf16, #tpu.memory_space<vmem>>, vector<32x128xbf16>
    %cst_46 = arith.constant dense<0.000000e+00> : vector<8x128xf32>
    %147 = tpu.matmul %145, %146, %cst_46 {dimension_numbers = #tpu.dot_dimension_numbers<[1], [0], [0], [1], [0, 0, 1, 1], [], []>} : vector<8x32xbf16>, vector<32x128xbf16>, vector<8x128xf32> -> vector<8x128xf32>
    %148 = arith.addf %147, %9 : vector<8x128xf32>
    %c48 = arith.constant 48 : index
    %c0_47 = arith.constant 0 : index
    %149 = vector.load %arg14[%c48, %c0_47] : memref<64x128xf32, #tpu.memory_space<vmem>>, vector<8x128xf32>
    %150 = arith.addf %149, %148 : vector<8x128xf32>
    %151 = arith.negf %150 : vector<8x128xf32>
    %152 = math.exp %151 : vector<8x128xf32>
    %cst_48 = arith.constant 1.000000e+00 : f32
    %153 = vector.broadcast %cst_48 : f32 to vector<8x128xf32>
    %154 = arith.addf %153, %152 : vector<8x128xf32>
    %155 = arith.divf %153, %154 : vector<8x128xf32>
    %156 = vector.extract_strided_slice %155 {offsets = [0, 0], sizes = [8, 32], strides = [1, 1]} : vector<8x128xf32> to vector<8x32xf32>
    %157 = vector.extract_strided_slice %155 {offsets = [0, 32], sizes = [8, 32], strides = [1, 1]} : vector<8x128xf32> to vector<8x32xf32>
    %158 = vector.extract_strided_slice %149 {offsets = [0, 64], sizes = [8, 32], strides = [1, 1]} : vector<8x128xf32> to vector<8x32xf32>
    %159 = vector.extract_strided_slice %148 {offsets = [0, 64], sizes = [8, 32], strides = [1, 1]} : vector<8x128xf32> to vector<8x32xf32>
    %160 = arith.mulf %156, %159 : vector<8x32xf32>
    %161 = arith.addf %158, %160 : vector<8x32xf32>
    %162 = math.tanh %161 : vector<8x32xf32>
    %cst_49 = arith.constant 1.000000e+00 : f32
    %163 = vector.broadcast %cst_49 : f32 to vector<8x32xf32>
    %164 = arith.subf %163, %157 : vector<8x32xf32>
    %165 = arith.mulf %164, %162 : vector<8x32xf32>
    %166 = arith.mulf %157, %144 : vector<8x32xf32>
    %167 = arith.addf %165, %166 : vector<8x32xf32>
    %168 = arith.truncf %167 : vector<8x32xf32> to vector<8x32xbf16>
    %c0_50 = arith.constant 0 : index
    %c0_51 = arith.constant 0 : index
    %169 = vector.load %arg5[%c0_50, %c0_51] : memref<32x128xbf16, #tpu.memory_space<vmem>>, vector<32x128xbf16>
    %cst_52 = arith.constant dense<0.000000e+00> : vector<8x128xf32>
    %170 = tpu.matmul %168, %169, %cst_52 {dimension_numbers = #tpu.dot_dimension_numbers<[1], [0], [0], [1], [0, 0, 1, 1], [], []>} : vector<8x32xbf16>, vector<32x128xbf16>, vector<8x128xf32> -> vector<8x128xf32>
    %171 = arith.addf %170, %9 : vector<8x128xf32>
    %c56 = arith.constant 56 : index
    %c0_53 = arith.constant 0 : index
    %172 = vector.load %arg14[%c56, %c0_53] : memref<64x128xf32, #tpu.memory_space<vmem>>, vector<8x128xf32>
    %173 = arith.addf %172, %171 : vector<8x128xf32>
    %174 = arith.negf %173 : vector<8x128xf32>
    %175 = math.exp %174 : vector<8x128xf32>
    %cst_54 = arith.constant 1.000000e+00 : f32
    %176 = vector.broadcast %cst_54 : f32 to vector<8x128xf32>
    %177 = arith.addf %176, %175 : vector<8x128xf32>
    %178 = arith.divf %176, %177 : vector<8x128xf32>
    %179 = vector.extract_strided_slice %178 {offsets = [0, 0], sizes = [8, 32], strides = [1, 1]} : vector<8x128xf32> to vector<8x32xf32>
    %180 = vector.extract_strided_slice %178 {offsets = [0, 32], sizes = [8, 32], strides = [1, 1]} : vector<8x128xf32> to vector<8x32xf32>
    %181 = vector.extract_strided_slice %172 {offsets = [0, 64], sizes = [8, 32], strides = [1, 1]} : vector<8x128xf32> to vector<8x32xf32>
    %182 = vector.extract_strided_slice %171 {offsets = [0, 64], sizes = [8, 32], strides = [1, 1]} : vector<8x128xf32> to vector<8x32xf32>
    %183 = arith.mulf %179, %182 : vector<8x32xf32>
    %184 = arith.addf %181, %183 : vector<8x32xf32>
    %185 = math.tanh %184 : vector<8x32xf32>
    %cst_55 = arith.constant 1.000000e+00 : f32
    %186 = vector.broadcast %cst_55 : f32 to vector<8x32xf32>
    %187 = arith.subf %186, %180 : vector<8x32xf32>
    %188 = arith.mulf %187, %185 : vector<8x32xf32>
    %189 = arith.mulf %180, %167 : vector<8x32xf32>
    %190 = arith.addf %188, %189 : vector<8x32xf32>
    %cst_56 = arith.constant 0.000000e+00 : f32
    %191 = vector.broadcast %cst_56 : f32 to vector<8x128xf32>
    %c0_57 = arith.constant 0 : index
    %c0_58 = arith.constant 0 : index
    %c0_59 = arith.constant 0 : index
    %192 = vector.load %arg13[%c0_57, %c0_58, %c0_59] : memref<8x8x128xf32, #tpu.memory_space<vmem>>, vector<1x8x128xf32>
    %193 = vector.shape_cast %192 : vector<1x8x128xf32> to vector<8x128xf32>
    %194 = vector.shape_cast %191 : vector<8x128xf32> to vector<1x8x128xf32>
    tpu.vector_store %arg13[%c0_57, %c0_58, %c0_59], %194 {strides = array<i32>} : memref<8x8x128xf32, #tpu.memory_space<vmem>>, vector<1x8x128xf32>,
    %c0_60 = arith.constant 0 : index
    %c0_61 = arith.constant 0 : index
    %c0_62 = arith.constant 0 : index
    %195 = vector.load %arg2[%c0_60, %c0_61, %c0_62] : memref<8x8x32xf32, #tpu.memory_space<vmem>>, vector<1x8x32xf32>
    %196 = vector.shape_cast %195 : vector<1x8x32xf32> to vector<8x32xf32>
    %c0_63 = arith.constant 0 : index
    %c0_64 = arith.constant 0 : index
    %197 = vector.load %arg1[%c0_63, %c0_64] : memref<8x32xf32, #tpu.memory_space<vmem>>, vector<8x32xf32>
    %c0_65 = arith.constant 0 : index
    %c0_66 = arith.constant 0 : index
    %198 = vector.load %arg10[%c0_65, %c0_66] : memref<1x128xf32, #tpu.memory_space<vmem>>, vector<1x128xf32>
    %199 = vector.shape_cast %198 : vector<1x128xf32> to vector<1x128xf32>
    %200 = vector.broadcast %199 : vector<1x128xf32> to vector<8x128xf32>
    %c0_67 = arith.constant 0 : index
    %c0_68 = arith.constant 0 : index
    %201 = vector.load %arg12[%c0_67, %c0_68] : memref<1x128xf32, #tpu.memory_space<vmem>>, vector<1x128xf32>
    %202 = vector.shape_cast %201 : vector<1x128xf32> to vector<1x128xf32>
    %203 = vector.broadcast %202 : vector<1x128xf32> to vector<8x128xf32>
    %cst_69 = arith.constant 0.000000e+00 : f32
    %204 = vector.broadcast %cst_69 : f32 to vector<8x96xf32>
    %205 = arith.truncf %190 : vector<8x32xf32> to vector<8x32xbf16>
    %c0_70 = arith.constant 0 : index
    %c0_71 = arith.constant 0 : index
    %206 = vector.load %arg9[%c0_70, %c0_71] : memref<32x128xbf16, #tpu.memory_space<vmem>>, vector<32x128xbf16>
    %cst_72 = arith.constant dense<0.000000e+00> : vector<8x128xf32>
    %207 = tpu.matmul %205, %206, %cst_72 {dimension_numbers = #tpu.dot_dimension_numbers<[1], [0], [0], [1], [0, 0, 1, 1], [], []>} : vector<8x32xbf16>, vector<32x128xbf16>, vector<8x128xf32> -> vector<8x128xf32>
    %208 = arith.addf %207, %200 : vector<8x128xf32>
    %209 = arith.truncf %196 : vector<8x32xf32> to vector<8x32xbf16>
    %c0_73 = arith.constant 0 : index
    %c0_74 = arith.constant 0 : index
    %210 = vector.load %arg8[%c0_73, %c0_74] : memref<32x32xbf16, #tpu.memory_space<vmem>>, vector<32x32xbf16>
    %cst_75 = arith.constant dense<0.000000e+00> : vector<8x32xf32>
    %211 = tpu.matmul %209, %210, %cst_75 {dimension_numbers = #tpu.dot_dimension_numbers<[1], [0], [0], [1], [0, 0, 1, 1], [], []>} : vector<8x32xbf16>, vector<32x32xbf16>, vector<8x32xf32> -> vector<8x32xf32>
    %212 = vector.extract_strided_slice %208 {offsets = [0, 0], sizes = [8, 32], strides = [1, 1]} : vector<8x128xf32> to vector<8x32xf32>
    %213 = arith.addf %211, %212 : vector<8x32xf32>
    %214 = math.tanh %213 : vector<8x32xf32>
    %215 = arith.truncf %214 : vector<8x32xf32> to vector<8x32xbf16>
    %c0_76 = arith.constant 0 : index
    %c0_77 = arith.constant 0 : index
    %216 = vector.load %arg11[%c0_76, %c0_77] : memref<32x128xbf16, #tpu.memory_space<vmem>>, vector<32x128xbf16>
    %cst_78 = arith.constant dense<0.000000e+00> : vector<8x128xf32>
    %217 = tpu.matmul %215, %216, %cst_78 {dimension_numbers = #tpu.dot_dimension_numbers<[1], [0], [0], [1], [0, 0, 1, 1], [], []>} : vector<8x32xbf16>, vector<32x128xbf16>, vector<8x128xf32> -> vector<8x128xf32>
    %218 = arith.addf %217, %203 : vector<8x128xf32>
    %219 = arith.addf %218, %208 : vector<8x128xf32>
    %220 = arith.negf %219 : vector<8x128xf32>
    %221 = math.exp %220 : vector<8x128xf32>
    %cst_79 = arith.constant 1.000000e+00 : f32
    %222 = vector.broadcast %cst_79 : f32 to vector<8x128xf32>
    %223 = arith.addf %222, %221 : vector<8x128xf32>
    %224 = arith.divf %222, %223 : vector<8x128xf32>
    %225 = vector.extract_strided_slice %224 {offsets = [0, 32], sizes = [8, 32], strides = [1, 1]} : vector<8x128xf32> to vector<8x32xf32>
    %226 = vector.extract_strided_slice %224 {offsets = [0, 64], sizes = [8, 32], strides = [1, 1]} : vector<8x128xf32> to vector<8x32xf32>
    %227 = vector.extract_strided_slice %218 {offsets = [0, 96], sizes = [8, 32], strides = [1, 1]} : vector<8x128xf32> to vector<8x32xf32>
    %228 = vector.extract_strided_slice %208 {offsets = [0, 96], sizes = [8, 32], strides = [1, 1]} : vector<8x128xf32> to vector<8x32xf32>
    %229 = arith.mulf %225, %228 : vector<8x32xf32>
    %230 = arith.addf %227, %229 : vector<8x32xf32>
    %231 = math.tanh %230 : vector<8x32xf32>
    %cst_80 = arith.constant 1.000000e+00 : f32
    %232 = vector.broadcast %cst_80 : f32 to vector<8x32xf32>
    %233 = arith.subf %232, %226 : vector<8x32xf32>
    %234 = arith.mulf %233, %231 : vector<8x32xf32>
    %235 = arith.mulf %226, %190 : vector<8x32xf32>
    %236 = arith.addf %234, %235 : vector<8x32xf32>
    %237 = arith.addf %236, %197 : vector<8x32xf32>
    %238 = tpu.concatenate %237, %204 in 1 : vector<8x32xf32>, vector<8x96xf32> -> vector<8x128xf32>
    %c1 = arith.constant 1 : index
    %c0_81 = arith.constant 0 : index
    %c0_82 = arith.constant 0 : index
    %239 = vector.load %arg13[%c1, %c0_81, %c0_82] : memref<8x8x128xf32, #tpu.memory_space<vmem>>, vector<1x8x128xf32>
    %240 = vector.shape_cast %239 : vector<1x8x128xf32> to vector<8x128xf32>
    %241 = vector.shape_cast %238 : vector<8x128xf32> to vector<1x8x128xf32>
    tpu.vector_store %arg13[%c1, %c0_81, %c0_82], %241 {strides = array<i32>} : memref<8x8x128xf32, #tpu.memory_space<vmem>>, vector<1x8x128xf32>,
    %c1_83 = arith.constant 1 : index
    %242 = memref.load %arg3[%c1_83] : memref<8xi32, #tpu.memory_space<smem>>
    %c0_i32 = arith.constant 0 : i32
    %243 = arith.cmpi sgt, %242, %c0_i32 : i32
    %c1_84 = arith.constant 1 : index
    %c0_85 = arith.constant 0 : index
    %c0_86 = arith.constant 0 : index
    %244 = vector.load %arg2[%c1_84, %c0_85, %c0_86] : memref<8x8x32xf32, #tpu.memory_space<vmem>>, vector<1x8x32xf32>
    %245 = vector.shape_cast %244 : vector<1x8x32xf32> to vector<8x32xf32>
    %246 = arith.select %243, %245, %237 : vector<8x32xf32>
    %247 = arith.truncf %236 : vector<8x32xf32> to vector<8x32xbf16>
    %c0_87 = arith.constant 0 : index
    %c0_88 = arith.constant 0 : index
    %248 = vector.load %arg9[%c0_87, %c0_88] : memref<32x128xbf16, #tpu.memory_space<vmem>>, vector<32x128xbf16>
    %cst_89 = arith.constant dense<0.000000e+00> : vector<8x128xf32>
    %249 = tpu.matmul %247, %248, %cst_89 {dimension_numbers = #tpu.dot_dimension_numbers<[1], [0], [0], [1], [0, 0, 1, 1], [], []>} : vector<8x32xbf16>, vector<32x128xbf16>, vector<8x128xf32> -> vector<8x128xf32>
    %250 = arith.addf %249, %200 : vector<8x128xf32>
    %251 = arith.truncf %246 : vector<8x32xf32> to vector<8x32xbf16>
    %c0_90 = arith.constant 0 : index
    %c0_91 = arith.constant 0 : index
    %252 = vector.load %arg8[%c0_90, %c0_91] : memref<32x32xbf16, #tpu.memory_space<vmem>>, vector<32x32xbf16>
    %cst_92 = arith.constant dense<0.000000e+00> : vector<8x32xf32>
    %253 = tpu.matmul %251, %252, %cst_92 {dimension_numbers = #tpu.dot_dimension_numbers<[1], [0], [0], [1], [0, 0, 1, 1], [], []>} : vector<8x32xbf16>, vector<32x32xbf16>, vector<8x32xf32> -> vector<8x32xf32>
    %254 = vector.extract_strided_slice %250 {offsets = [0, 0], sizes = [8, 32], strides = [1, 1]} : vector<8x128xf32> to vector<8x32xf32>
    %255 = arith.addf %253, %254 : vector<8x32xf32>
    %256 = math.tanh %255 : vector<8x32xf32>
    %257 = arith.truncf %256 : vector<8x32xf32> to vector<8x32xbf16>
    %c0_93 = arith.constant 0 : index
    %c0_94 = arith.constant 0 : index
    %258 = vector.load %arg11[%c0_93, %c0_94] : memref<32x128xbf16, #tpu.memory_space<vmem>>, vector<32x128xbf16>
    %cst_95 = arith.constant dense<0.000000e+00> : vector<8x128xf32>
    %259 = tpu.matmul %257, %258, %cst_95 {dimension_numbers = #tpu.dot_dimension_numbers<[1], [0], [0], [1], [0, 0, 1, 1], [], []>} : vector<8x32xbf16>, vector<32x128xbf16>, vector<8x128xf32> -> vector<8x128xf32>
    %260 = arith.addf %259, %203 : vector<8x128xf32>
    %261 = arith.addf %260, %250 : vector<8x128xf32>
    %262 = arith.negf %261 : vector<8x128xf32>
    %263 = math.exp %262 : vector<8x128xf32>
    %cst_96 = arith.constant 1.000000e+00 : f32
    %264 = vector.broadcast %cst_96 : f32 to vector<8x128xf32>
    %265 = arith.addf %264, %263 : vector<8x128xf32>
    %266 = arith.divf %264, %265 : vector<8x128xf32>
    %267 = vector.extract_strided_slice %266 {offsets = [0, 32], sizes = [8, 32], strides = [1, 1]} : vector<8x128xf32> to vector<8x32xf32>
    %268 = vector.extract_strided_slice %266 {offsets = [0, 64], sizes = [8, 32], strides = [1, 1]} : vector<8x128xf32> to vector<8x32xf32>
    %269 = vector.extract_strided_slice %260 {offsets = [0, 96], sizes = [8, 32], strides = [1, 1]} : vector<8x128xf32> to vector<8x32xf32>
    %270 = vector.extract_strided_slice %250 {offsets = [0, 96], sizes = [8, 32], strides = [1, 1]} : vector<8x128xf32> to vector<8x32xf32>
    %271 = arith.mulf %267, %270 : vector<8x32xf32>
    %272 = arith.addf %269, %271 : vector<8x32xf32>
    %273 = math.tanh %272 : vector<8x32xf32>
    %cst_97 = arith.constant 1.000000e+00 : f32
    %274 = vector.broadcast %cst_97 : f32 to vector<8x32xf32>
    %275 = arith.subf %274, %268 : vector<8x32xf32>
    %276 = arith.mulf %275, %273 : vector<8x32xf32>
    %277 = arith.mulf %268, %236 : vector<8x32xf32>
    %278 = arith.addf %276, %277 : vector<8x32xf32>
    %279 = arith.addf %278, %246 : vector<8x32xf32>
    %280 = tpu.concatenate %279, %204 in 1 : vector<8x32xf32>, vector<8x96xf32> -> vector<8x128xf32>
    %c2 = arith.constant 2 : index
    %c0_98 = arith.constant 0 : index
    %c0_99 = arith.constant 0 : index
    %281 = vector.load %arg13[%c2, %c0_98, %c0_99] : memref<8x8x128xf32, #tpu.memory_space<vmem>>, vector<1x8x128xf32>
    %282 = vector.shape_cast %281 : vector<1x8x128xf32> to vector<8x128xf32>
    %283 = vector.shape_cast %280 : vector<8x128xf32> to vector<1x8x128xf32>
    tpu.vector_store %arg13[%c2, %c0_98, %c0_99], %283 {strides = array<i32>} : memref<8x8x128xf32, #tpu.memory_space<vmem>>, vector<1x8x128xf32>,
    %c2_100 = arith.constant 2 : index
    %284 = memref.load %arg3[%c2_100] : memref<8xi32, #tpu.memory_space<smem>>
    %c0_i32_101 = arith.constant 0 : i32
    %285 = arith.cmpi sgt, %284, %c0_i32_101 : i32
    %c2_102 = arith.constant 2 : index
    %c0_103 = arith.constant 0 : index
    %c0_104 = arith.constant 0 : index
    %286 = vector.load %arg2[%c2_102, %c0_103, %c0_104] : memref<8x8x32xf32, #tpu.memory_space<vmem>>, vector<1x8x32xf32>
    %287 = vector.shape_cast %286 : vector<1x8x32xf32> to vector<8x32xf32>
    %288 = arith.select %285, %287, %279 : vector<8x32xf32>
    %289 = arith.truncf %278 : vector<8x32xf32> to vector<8x32xbf16>
    %c0_105 = arith.constant 0 : index
    %c0_106 = arith.constant 0 : index
    %290 = vector.load %arg9[%c0_105, %c0_106] : memref<32x128xbf16, #tpu.memory_space<vmem>>, vector<32x128xbf16>
    %cst_107 = arith.constant dense<0.000000e+00> : vector<8x128xf32>
    %291 = tpu.matmul %289, %290, %cst_107 {dimension_numbers = #tpu.dot_dimension_numbers<[1], [0], [0], [1], [0, 0, 1, 1], [], []>} : vector<8x32xbf16>, vector<32x128xbf16>, vector<8x128xf32> -> vector<8x128xf32>
    %292 = arith.addf %291, %200 : vector<8x128xf32>
    %293 = arith.truncf %288 : vector<8x32xf32> to vector<8x32xbf16>
    %c0_108 = arith.constant 0 : index
    %c0_109 = arith.constant 0 : index
    %294 = vector.load %arg8[%c0_108, %c0_109] : memref<32x32xbf16, #tpu.memory_space<vmem>>, vector<32x32xbf16>
    %cst_110 = arith.constant dense<0.000000e+00> : vector<8x32xf32>
    %295 = tpu.matmul %293, %294, %cst_110 {dimension_numbers = #tpu.dot_dimension_numbers<[1], [0], [0], [1], [0, 0, 1, 1], [], []>} : vector<8x32xbf16>, vector<32x32xbf16>, vector<8x32xf32> -> vector<8x32xf32>
    %296 = vector.extract_strided_slice %292 {offsets = [0, 0], sizes = [8, 32], strides = [1, 1]} : vector<8x128xf32> to vector<8x32xf32>
    %297 = arith.addf %295, %296 : vector<8x32xf32>
    %298 = math.tanh %297 : vector<8x32xf32>
    %299 = arith.truncf %298 : vector<8x32xf32> to vector<8x32xbf16>
    %c0_111 = arith.constant 0 : index
    %c0_112 = arith.constant 0 : index
    %300 = vector.load %arg11[%c0_111, %c0_112] : memref<32x128xbf16, #tpu.memory_space<vmem>>, vector<32x128xbf16>
    %cst_113 = arith.constant dense<0.000000e+00> : vector<8x128xf32>
    %301 = tpu.matmul %299, %300, %cst_113 {dimension_numbers = #tpu.dot_dimension_numbers<[1], [0], [0], [1], [0, 0, 1, 1], [], []>} : vector<8x32xbf16>, vector<32x128xbf16>, vector<8x128xf32> -> vector<8x128xf32>
    %302 = arith.addf %301, %203 : vector<8x128xf32>
    %303 = arith.addf %302, %292 : vector<8x128xf32>
    %304 = arith.negf %303 : vector<8x128xf32>
    %305 = math.exp %304 : vector<8x128xf32>
    %cst_114 = arith.constant 1.000000e+00 : f32
    %306 = vector.broadcast %cst_114 : f32 to vector<8x128xf32>
    %307 = arith.addf %306, %305 : vector<8x128xf32>
    %308 = arith.divf %306, %307 : vector<8x128xf32>
    %309 = vector.extract_strided_slice %308 {offsets = [0, 32], sizes = [8, 32], strides = [1, 1]} : vector<8x128xf32> to vector<8x32xf32>
    %310 = vector.extract_strided_slice %308 {offsets = [0, 64], sizes = [8, 32], strides = [1, 1]} : vector<8x128xf32> to vector<8x32xf32>
    %311 = vector.extract_strided_slice %302 {offsets = [0, 96], sizes = [8, 32], strides = [1, 1]} : vector<8x128xf32> to vector<8x32xf32>
    %312 = vector.extract_strided_slice %292 {offsets = [0, 96], sizes = [8, 32], strides = [1, 1]} : vector<8x128xf32> to vector<8x32xf32>
    %313 = arith.mulf %309, %312 : vector<8x32xf32>
    %314 = arith.addf %311, %313 : vector<8x32xf32>
    %315 = math.tanh %314 : vector<8x32xf32>
    %cst_115 = arith.constant 1.000000e+00 : f32
    %316 = vector.broadcast %cst_115 : f32 to vector<8x32xf32>
    %317 = arith.subf %316, %310 : vector<8x32xf32>
    %318 = arith.mulf %317, %315 : vector<8x32xf32>
    %319 = arith.mulf %310, %278 : vector<8x32xf32>
    %320 = arith.addf %318, %319 : vector<8x32xf32>
    %321 = arith.addf %320, %288 : vector<8x32xf32>
    %322 = tpu.concatenate %321, %204 in 1 : vector<8x32xf32>, vector<8x96xf32> -> vector<8x128xf32>
    %c3 = arith.constant 3 : index
    %c0_116 = arith.constant 0 : index
    %c0_117 = arith.constant 0 : index
    %323 = vector.load %arg13[%c3, %c0_116, %c0_117] : memref<8x8x128xf32, #tpu.memory_space<vmem>>, vector<1x8x128xf32>
    %324 = vector.shape_cast %323 : vector<1x8x128xf32> to vector<8x128xf32>
    %325 = vector.shape_cast %322 : vector<8x128xf32> to vector<1x8x128xf32>
    tpu.vector_store %arg13[%c3, %c0_116, %c0_117], %325 {strides = array<i32>} : memref<8x8x128xf32, #tpu.memory_space<vmem>>, vector<1x8x128xf32>,
    %c3_118 = arith.constant 3 : index
    %326 = memref.load %arg3[%c3_118] : memref<8xi32, #tpu.memory_space<smem>>
    %c0_i32_119 = arith.constant 0 : i32
    %327 = arith.cmpi sgt, %326, %c0_i32_119 : i32
    %c3_120 = arith.constant 3 : index
    %c0_121 = arith.constant 0 : index
    %c0_122 = arith.constant 0 : index
    %328 = vector.load %arg2[%c3_120, %c0_121, %c0_122] : memref<8x8x32xf32, #tpu.memory_space<vmem>>, vector<1x8x32xf32>
    %329 = vector.shape_cast %328 : vector<1x8x32xf32> to vector<8x32xf32>
    %330 = arith.select %327, %329, %321 : vector<8x32xf32>
    %331 = arith.truncf %320 : vector<8x32xf32> to vector<8x32xbf16>
    %c0_123 = arith.constant 0 : index
    %c0_124 = arith.constant 0 : index
    %332 = vector.load %arg9[%c0_123, %c0_124] : memref<32x128xbf16, #tpu.memory_space<vmem>>, vector<32x128xbf16>
    %cst_125 = arith.constant dense<0.000000e+00> : vector<8x128xf32>
    %333 = tpu.matmul %331, %332, %cst_125 {dimension_numbers = #tpu.dot_dimension_numbers<[1], [0], [0], [1], [0, 0, 1, 1], [], []>} : vector<8x32xbf16>, vector<32x128xbf16>, vector<8x128xf32> -> vector<8x128xf32>
    %334 = arith.addf %333, %200 : vector<8x128xf32>
    %335 = arith.truncf %330 : vector<8x32xf32> to vector<8x32xbf16>
    %c0_126 = arith.constant 0 : index
    %c0_127 = arith.constant 0 : index
    %336 = vector.load %arg8[%c0_126, %c0_127] : memref<32x32xbf16, #tpu.memory_space<vmem>>, vector<32x32xbf16>
    %cst_128 = arith.constant dense<0.000000e+00> : vector<8x32xf32>
    %337 = tpu.matmul %335, %336, %cst_128 {dimension_numbers = #tpu.dot_dimension_numbers<[1], [0], [0], [1], [0, 0, 1, 1], [], []>} : vector<8x32xbf16>, vector<32x32xbf16>, vector<8x32xf32> -> vector<8x32xf32>
    %338 = vector.extract_strided_slice %334 {offsets = [0, 0], sizes = [8, 32], strides = [1, 1]} : vector<8x128xf32> to vector<8x32xf32>
    %339 = arith.addf %337, %338 : vector<8x32xf32>
    %340 = math.tanh %339 : vector<8x32xf32>
    %341 = arith.truncf %340 : vector<8x32xf32> to vector<8x32xbf16>
    %c0_129 = arith.constant 0 : index
    %c0_130 = arith.constant 0 : index
    %342 = vector.load %arg11[%c0_129, %c0_130] : memref<32x128xbf16, #tpu.memory_space<vmem>>, vector<32x128xbf16>
    %cst_131 = arith.constant dense<0.000000e+00> : vector<8x128xf32>
    %343 = tpu.matmul %341, %342, %cst_131 {dimension_numbers = #tpu.dot_dimension_numbers<[1], [0], [0], [1], [0, 0, 1, 1], [], []>} : vector<8x32xbf16>, vector<32x128xbf16>, vector<8x128xf32> -> vector<8x128xf32>
    %344 = arith.addf %343, %203 : vector<8x128xf32>
    %345 = arith.addf %344, %334 : vector<8x128xf32>
    %346 = arith.negf %345 : vector<8x128xf32>
    %347 = math.exp %346 : vector<8x128xf32>
    %cst_132 = arith.constant 1.000000e+00 : f32
    %348 = vector.broadcast %cst_132 : f32 to vector<8x128xf32>
    %349 = arith.addf %348, %347 : vector<8x128xf32>
    %350 = arith.divf %348, %349 : vector<8x128xf32>
    %351 = vector.extract_strided_slice %350 {offsets = [0, 32], sizes = [8, 32], strides = [1, 1]} : vector<8x128xf32> to vector<8x32xf32>
    %352 = vector.extract_strided_slice %350 {offsets = [0, 64], sizes = [8, 32], strides = [1, 1]} : vector<8x128xf32> to vector<8x32xf32>
    %353 = vector.extract_strided_slice %344 {offsets = [0, 96], sizes = [8, 32], strides = [1, 1]} : vector<8x128xf32> to vector<8x32xf32>
    %354 = vector.extract_strided_slice %334 {offsets = [0, 96], sizes = [8, 32], strides = [1, 1]} : vector<8x128xf32> to vector<8x32xf32>
    %355 = arith.mulf %351, %354 : vector<8x32xf32>
    %356 = arith.addf %353, %355 : vector<8x32xf32>
    %357 = math.tanh %356 : vector<8x32xf32>
    %cst_133 = arith.constant 1.000000e+00 : f32
    %358 = vector.broadcast %cst_133 : f32 to vector<8x32xf32>
    %359 = arith.subf %358, %352 : vector<8x32xf32>
    %360 = arith.mulf %359, %357 : vector<8x32xf32>
    %361 = arith.mulf %352, %320 : vector<8x32xf32>
    %362 = arith.addf %360, %361 : vector<8x32xf32>
    %363 = arith.addf %362, %330 : vector<8x32xf32>
    %364 = tpu.concatenate %363, %204 in 1 : vector<8x32xf32>, vector<8x96xf32> -> vector<8x128xf32>
    %c4 = arith.constant 4 : index
    %c0_134 = arith.constant 0 : index
    %c0_135 = arith.constant 0 : index
    %365 = vector.load %arg13[%c4, %c0_134, %c0_135] : memref<8x8x128xf32, #tpu.memory_space<vmem>>, vector<1x8x128xf32>
    %366 = vector.shape_cast %365 : vector<1x8x128xf32> to vector<8x128xf32>
    %367 = vector.shape_cast %364 : vector<8x128xf32> to vector<1x8x128xf32>
    tpu.vector_store %arg13[%c4, %c0_134, %c0_135], %367 {strides = array<i32>} : memref<8x8x128xf32, #tpu.memory_space<vmem>>, vector<1x8x128xf32>,
    %c4_136 = arith.constant 4 : index
    %368 = memref.load %arg3[%c4_136] : memref<8xi32, #tpu.memory_space<smem>>
    %c0_i32_137 = arith.constant 0 : i32
    %369 = arith.cmpi sgt, %368, %c0_i32_137 : i32
    %c4_138 = arith.constant 4 : index
    %c0_139 = arith.constant 0 : index
    %c0_140 = arith.constant 0 : index
    %370 = vector.load %arg2[%c4_138, %c0_139, %c0_140] : memref<8x8x32xf32, #tpu.memory_space<vmem>>, vector<1x8x32xf32>
    %371 = vector.shape_cast %370 : vector<1x8x32xf32> to vector<8x32xf32>
    %372 = arith.select %369, %371, %363 : vector<8x32xf32>
    %373 = arith.truncf %362 : vector<8x32xf32> to vector<8x32xbf16>
    %c0_141 = arith.constant 0 : index
    %c0_142 = arith.constant 0 : index
    %374 = vector.load %arg9[%c0_141, %c0_142] : memref<32x128xbf16, #tpu.memory_space<vmem>>, vector<32x128xbf16>
    %cst_143 = arith.constant dense<0.000000e+00> : vector<8x128xf32>
    %375 = tpu.matmul %373, %374, %cst_143 {dimension_numbers = #tpu.dot_dimension_numbers<[1], [0], [0], [1], [0, 0, 1, 1], [], []>} : vector<8x32xbf16>, vector<32x128xbf16>, vector<8x128xf32> -> vector<8x128xf32>
    %376 = arith.addf %375, %200 : vector<8x128xf32>
    %377 = arith.truncf %372 : vector<8x32xf32> to vector<8x32xbf16>
    %c0_144 = arith.constant 0 : index
    %c0_145 = arith.constant 0 : index
    %378 = vector.load %arg8[%c0_144, %c0_145] : memref<32x32xbf16, #tpu.memory_space<vmem>>, vector<32x32xbf16>
    %cst_146 = arith.constant dense<0.000000e+00> : vector<8x32xf32>
    %379 = tpu.matmul %377, %378, %cst_146 {dimension_numbers = #tpu.dot_dimension_numbers<[1], [0], [0], [1], [0, 0, 1, 1], [], []>} : vector<8x32xbf16>, vector<32x32xbf16>, vector<8x32xf32> -> vector<8x32xf32>
    %380 = vector.extract_strided_slice %376 {offsets = [0, 0], sizes = [8, 32], strides = [1, 1]} : vector<8x128xf32> to vector<8x32xf32>
    %381 = arith.addf %379, %380 : vector<8x32xf32>
    %382 = math.tanh %381 : vector<8x32xf32>
    %383 = arith.truncf %382 : vector<8x32xf32> to vector<8x32xbf16>
    %c0_147 = arith.constant 0 : index
    %c0_148 = arith.constant 0 : index
    %384 = vector.load %arg11[%c0_147, %c0_148] : memref<32x128xbf16, #tpu.memory_space<vmem>>, vector<32x128xbf16>
    %cst_149 = arith.constant dense<0.000000e+00> : vector<8x128xf32>
    %385 = tpu.matmul %383, %384, %cst_149 {dimension_numbers = #tpu.dot_dimension_numbers<[1], [0], [0], [1], [0, 0, 1, 1], [], []>} : vector<8x32xbf16>, vector<32x128xbf16>, vector<8x128xf32> -> vector<8x128xf32>
    %386 = arith.addf %385, %203 : vector<8x128xf32>
    %387 = arith.addf %386, %376 : vector<8x128xf32>
    %388 = arith.negf %387 : vector<8x128xf32>
    %389 = math.exp %388 : vector<8x128xf32>
    %cst_150 = arith.constant 1.000000e+00 : f32
    %390 = vector.broadcast %cst_150 : f32 to vector<8x128xf32>
    %391 = arith.addf %390, %389 : vector<8x128xf32>
    %392 = arith.divf %390, %391 : vector<8x128xf32>
    %393 = vector.extract_strided_slice %392 {offsets = [0, 32], sizes = [8, 32], strides = [1, 1]} : vector<8x128xf32> to vector<8x32xf32>
    %394 = vector.extract_strided_slice %392 {offsets = [0, 64], sizes = [8, 32], strides = [1, 1]} : vector<8x128xf32> to vector<8x32xf32>
    %395 = vector.extract_strided_slice %386 {offsets = [0, 96], sizes = [8, 32], strides = [1, 1]} : vector<8x128xf32> to vector<8x32xf32>
    %396 = vector.extract_strided_slice %376 {offsets = [0, 96], sizes = [8, 32], strides = [1, 1]} : vector<8x128xf32> to vector<8x32xf32>
    %397 = arith.mulf %393, %396 : vector<8x32xf32>
    %398 = arith.addf %395, %397 : vector<8x32xf32>
    %399 = math.tanh %398 : vector<8x32xf32>
    %cst_151 = arith.constant 1.000000e+00 : f32
    %400 = vector.broadcast %cst_151 : f32 to vector<8x32xf32>
    %401 = arith.subf %400, %394 : vector<8x32xf32>
    %402 = arith.mulf %401, %399 : vector<8x32xf32>
    %403 = arith.mulf %394, %362 : vector<8x32xf32>
    %404 = arith.addf %402, %403 : vector<8x32xf32>
    %405 = arith.addf %404, %372 : vector<8x32xf32>
    %406 = tpu.concatenate %405, %204 in 1 : vector<8x32xf32>, vector<8x96xf32> -> vector<8x128xf32>
    %c5 = arith.constant 5 : index
    %c0_152 = arith.constant 0 : index
    %c0_153 = arith.constant 0 : index
    %407 = vector.load %arg13[%c5, %c0_152, %c0_153] : memref<8x8x128xf32, #tpu.memory_space<vmem>>, vector<1x8x128xf32>
    %408 = vector.shape_cast %407 : vector<1x8x128xf32> to vector<8x128xf32>
    %409 = vector.shape_cast %406 : vector<8x128xf32> to vector<1x8x128xf32>
    tpu.vector_store %arg13[%c5, %c0_152, %c0_153], %409 {strides = array<i32>} : memref<8x8x128xf32, #tpu.memory_space<vmem>>, vector<1x8x128xf32>,
    %c5_154 = arith.constant 5 : index
    %410 = memref.load %arg3[%c5_154] : memref<8xi32, #tpu.memory_space<smem>>
    %c0_i32_155 = arith.constant 0 : i32
    %411 = arith.cmpi sgt, %410, %c0_i32_155 : i32
    %c5_156 = arith.constant 5 : index
    %c0_157 = arith.constant 0 : index
    %c0_158 = arith.constant 0 : index
    %412 = vector.load %arg2[%c5_156, %c0_157, %c0_158] : memref<8x8x32xf32, #tpu.memory_space<vmem>>, vector<1x8x32xf32>
    %413 = vector.shape_cast %412 : vector<1x8x32xf32> to vector<8x32xf32>
    %414 = arith.select %411, %413, %405 : vector<8x32xf32>
    %415 = arith.truncf %404 : vector<8x32xf32> to vector<8x32xbf16>
    %c0_159 = arith.constant 0 : index
    %c0_160 = arith.constant 0 : index
    %416 = vector.load %arg9[%c0_159, %c0_160] : memref<32x128xbf16, #tpu.memory_space<vmem>>, vector<32x128xbf16>
    %cst_161 = arith.constant dense<0.000000e+00> : vector<8x128xf32>
    %417 = tpu.matmul %415, %416, %cst_161 {dimension_numbers = #tpu.dot_dimension_numbers<[1], [0], [0], [1], [0, 0, 1, 1], [], []>} : vector<8x32xbf16>, vector<32x128xbf16>, vector<8x128xf32> -> vector<8x128xf32>
    %418 = arith.addf %417, %200 : vector<8x128xf32>
    %419 = arith.truncf %414 : vector<8x32xf32> to vector<8x32xbf16>
    %c0_162 = arith.constant 0 : index
    %c0_163 = arith.constant 0 : index
    %420 = vector.load %arg8[%c0_162, %c0_163] : memref<32x32xbf16, #tpu.memory_space<vmem>>, vector<32x32xbf16>
    %cst_164 = arith.constant dense<0.000000e+00> : vector<8x32xf32>
    %421 = tpu.matmul %419, %420, %cst_164 {dimension_numbers = #tpu.dot_dimension_numbers<[1], [0], [0], [1], [0, 0, 1, 1], [], []>} : vector<8x32xbf16>, vector<32x32xbf16>, vector<8x32xf32> -> vector<8x32xf32>
    %422 = vector.extract_strided_slice %418 {offsets = [0, 0], sizes = [8, 32], strides = [1, 1]} : vector<8x128xf32> to vector<8x32xf32>
    %423 = arith.addf %421, %422 : vector<8x32xf32>
    %424 = math.tanh %423 : vector<8x32xf32>
    %425 = arith.truncf %424 : vector<8x32xf32> to vector<8x32xbf16>
    %c0_165 = arith.constant 0 : index
    %c0_166 = arith.constant 0 : index
    %426 = vector.load %arg11[%c0_165, %c0_166] : memref<32x128xbf16, #tpu.memory_space<vmem>>, vector<32x128xbf16>
    %cst_167 = arith.constant dense<0.000000e+00> : vector<8x128xf32>
    %427 = tpu.matmul %425, %426, %cst_167 {dimension_numbers = #tpu.dot_dimension_numbers<[1], [0], [0], [1], [0, 0, 1, 1], [], []>} : vector<8x32xbf16>, vector<32x128xbf16>, vector<8x128xf32> -> vector<8x128xf32>
    %428 = arith.addf %427, %203 : vector<8x128xf32>
    %429 = arith.addf %428, %418 : vector<8x128xf32>
    %430 = arith.negf %429 : vector<8x128xf32>
    %431 = math.exp %430 : vector<8x128xf32>
    %cst_168 = arith.constant 1.000000e+00 : f32
    %432 = vector.broadcast %cst_168 : f32 to vector<8x128xf32>
    %433 = arith.addf %432, %431 : vector<8x128xf32>
    %434 = arith.divf %432, %433 : vector<8x128xf32>
    %435 = vector.extract_strided_slice %434 {offsets = [0, 32], sizes = [8, 32], strides = [1, 1]} : vector<8x128xf32> to vector<8x32xf32>
    %436 = vector.extract_strided_slice %434 {offsets = [0, 64], sizes = [8, 32], strides = [1, 1]} : vector<8x128xf32> to vector<8x32xf32>
    %437 = vector.extract_strided_slice %428 {offsets = [0, 96], sizes = [8, 32], strides = [1, 1]} : vector<8x128xf32> to vector<8x32xf32>
    %438 = vector.extract_strided_slice %418 {offsets = [0, 96], sizes = [8, 32], strides = [1, 1]} : vector<8x128xf32> to vector<8x32xf32>
    %439 = arith.mulf %435, %438 : vector<8x32xf32>
    %440 = arith.addf %437, %439 : vector<8x32xf32>
    %441 = math.tanh %440 : vector<8x32xf32>
    %cst_169 = arith.constant 1.000000e+00 : f32
    %442 = vector.broadcast %cst_169 : f32 to vector<8x32xf32>
    %443 = arith.subf %442, %436 : vector<8x32xf32>
    %444 = arith.mulf %443, %441 : vector<8x32xf32>
    %445 = arith.mulf %436, %404 : vector<8x32xf32>
    %446 = arith.addf %444, %445 : vector<8x32xf32>
    %447 = arith.addf %446, %414 : vector<8x32xf32>
    %448 = tpu.concatenate %447, %204 in 1 : vector<8x32xf32>, vector<8x96xf32> -> vector<8x128xf32>
    %c6 = arith.constant 6 : index
    %c0_170 = arith.constant 0 : index
    %c0_171 = arith.constant 0 : index
    %449 = vector.load %arg13[%c6, %c0_170, %c0_171] : memref<8x8x128xf32, #tpu.memory_space<vmem>>, vector<1x8x128xf32>
    %450 = vector.shape_cast %449 : vector<1x8x128xf32> to vector<8x128xf32>
    %451 = vector.shape_cast %448 : vector<8x128xf32> to vector<1x8x128xf32>
    tpu.vector_store %arg13[%c6, %c0_170, %c0_171], %451 {strides = array<i32>} : memref<8x8x128xf32, #tpu.memory_space<vmem>>, vector<1x8x128xf32>,
    %c6_172 = arith.constant 6 : index
    %452 = memref.load %arg3[%c6_172] : memref<8xi32, #tpu.memory_space<smem>>
    %c0_i32_173 = arith.constant 0 : i32
    %453 = arith.cmpi sgt, %452, %c0_i32_173 : i32
    %c6_174 = arith.constant 6 : index
    %c0_175 = arith.constant 0 : index
    %c0_176 = arith.constant 0 : index
    %454 = vector.load %arg2[%c6_174, %c0_175, %c0_176] : memref<8x8x32xf32, #tpu.memory_space<vmem>>, vector<1x8x32xf32>
    %455 = vector.shape_cast %454 : vector<1x8x32xf32> to vector<8x32xf32>
    %456 = arith.select %453, %455, %447 : vector<8x32xf32>
    %457 = arith.truncf %446 : vector<8x32xf32> to vector<8x32xbf16>
    %c0_177 = arith.constant 0 : index
    %c0_178 = arith.constant 0 : index
    %458 = vector.load %arg9[%c0_177, %c0_178] : memref<32x128xbf16, #tpu.memory_space<vmem>>, vector<32x128xbf16>
    %cst_179 = arith.constant dense<0.000000e+00> : vector<8x128xf32>
    %459 = tpu.matmul %457, %458, %cst_179 {dimension_numbers = #tpu.dot_dimension_numbers<[1], [0], [0], [1], [0, 0, 1, 1], [], []>} : vector<8x32xbf16>, vector<32x128xbf16>, vector<8x128xf32> -> vector<8x128xf32>
    %460 = arith.addf %459, %200 : vector<8x128xf32>
    %461 = arith.truncf %456 : vector<8x32xf32> to vector<8x32xbf16>
    %c0_180 = arith.constant 0 : index
    %c0_181 = arith.constant 0 : index
    %462 = vector.load %arg8[%c0_180, %c0_181] : memref<32x32xbf16, #tpu.memory_space<vmem>>, vector<32x32xbf16>
    %cst_182 = arith.constant dense<0.000000e+00> : vector<8x32xf32>
    %463 = tpu.matmul %461, %462, %cst_182 {dimension_numbers = #tpu.dot_dimension_numbers<[1], [0], [0], [1], [0, 0, 1, 1], [], []>} : vector<8x32xbf16>, vector<32x32xbf16>, vector<8x32xf32> -> vector<8x32xf32>
    %464 = vector.extract_strided_slice %460 {offsets = [0, 0], sizes = [8, 32], strides = [1, 1]} : vector<8x128xf32> to vector<8x32xf32>
    %465 = arith.addf %463, %464 : vector<8x32xf32>
    %466 = math.tanh %465 : vector<8x32xf32>
    %467 = arith.truncf %466 : vector<8x32xf32> to vector<8x32xbf16>
    %c0_183 = arith.constant 0 : index
    %c0_184 = arith.constant 0 : index
    %468 = vector.load %arg11[%c0_183, %c0_184] : memref<32x128xbf16, #tpu.memory_space<vmem>>, vector<32x128xbf16>
    %cst_185 = arith.constant dense<0.000000e+00> : vector<8x128xf32>
    %469 = tpu.matmul %467, %468, %cst_185 {dimension_numbers = #tpu.dot_dimension_numbers<[1], [0], [0], [1], [0, 0, 1, 1], [], []>} : vector<8x32xbf16>, vector<32x128xbf16>, vector<8x128xf32> -> vector<8x128xf32>
    %470 = arith.addf %469, %203 : vector<8x128xf32>
    %471 = arith.addf %470, %460 : vector<8x128xf32>
    %472 = arith.negf %471 : vector<8x128xf32>
    %473 = math.exp %472 : vector<8x128xf32>
    %cst_186 = arith.constant 1.000000e+00 : f32
    %474 = vector.broadcast %cst_186 : f32 to vector<8x128xf32>
    %475 = arith.addf %474, %473 : vector<8x128xf32>
    %476 = arith.divf %474, %475 : vector<8x128xf32>
    %477 = vector.extract_strided_slice %476 {offsets = [0, 32], sizes = [8, 32], strides = [1, 1]} : vector<8x128xf32> to vector<8x32xf32>
    %478 = vector.extract_strided_slice %476 {offsets = [0, 64], sizes = [8, 32], strides = [1, 1]} : vector<8x128xf32> to vector<8x32xf32>
    %479 = vector.extract_strided_slice %470 {offsets = [0, 96], sizes = [8, 32], strides = [1, 1]} : vector<8x128xf32> to vector<8x32xf32>
    %480 = vector.extract_strided_slice %460 {offsets = [0, 96], sizes = [8, 32], strides = [1, 1]} : vector<8x128xf32> to vector<8x32xf32>
    %481 = arith.mulf %477, %480 : vector<8x32xf32>
    %482 = arith.addf %479, %481 : vector<8x32xf32>
    %483 = math.tanh %482 : vector<8x32xf32>
    %cst_187 = arith.constant 1.000000e+00 : f32
    %484 = vector.broadcast %cst_187 : f32 to vector<8x32xf32>
    %485 = arith.subf %484, %478 : vector<8x32xf32>
    %486 = arith.mulf %485, %483 : vector<8x32xf32>
    %487 = arith.mulf %478, %446 : vector<8x32xf32>
    %488 = arith.addf %486, %487 : vector<8x32xf32>
    %489 = arith.addf %488, %456 : vector<8x32xf32>
    %490 = tpu.concatenate %489, %204 in 1 : vector<8x32xf32>, vector<8x96xf32> -> vector<8x128xf32>
    %c7 = arith.constant 7 : index
    %c0_188 = arith.constant 0 : index
    %c0_189 = arith.constant 0 : index
    %491 = vector.load %arg13[%c7, %c0_188, %c0_189] : memref<8x8x128xf32, #tpu.memory_space<vmem>>, vector<1x8x128xf32>
    %492 = vector.shape_cast %491 : vector<1x8x128xf32> to vector<8x128xf32>
    %493 = vector.shape_cast %490 : vector<8x128xf32> to vector<1x8x128xf32>
    tpu.vector_store %arg13[%c7, %c0_188, %c0_189], %493 {strides = array<i32>} : memref<8x8x128xf32, #tpu.memory_space<vmem>>, vector<1x8x128xf32>,
    return
  }
}

</mosaic_0001>

<bundles_post_ra>
// kernel: tpu_custom_call.1
= control target key start
LH: loop header
LB: loop body
LE: loop exit
PB: predicated region body
PF: predicated region fallthrough
CT: control target
= control target key end

     0   :  { %18 = vsyncpa [#allocation4], 0  ;;  %s2804_s0 = inlined_call_operand.vmem [shape: bf16[64,32], index: 0, kind: input, shape index: {}]   ;;  %s2805_s1 = inlined_call_operand.hbm [shape: f32[8,32], index: 1, kind: input, shape index: {}]   ;;  %s2806_s2 = inlined_call_operand.hbm [shape: f32[8,8,32], index: 2, kind: input, shape index: {}]   ;;  %s2807_s3 = inlined_call_operand.vmem [shape: s32[8], index: 3, kind: input, shape index: {}]   ;;  %s2808_s4 = inlined_call_operand.vmem [shape: bf16[32,128], index: 4, kind: input, shape index: {}]   ;;  %s2809_s5 = inlined_call_operand.vmem [shape: bf16[32,128], index: 5, kind: input, shape index: {}]   ;;  %s2810_s6 = inlined_call_operand.vmem [shape: f32[1,128], index: 6, kind: input, shape index: {}]   ;;  %s2811_s7 = inlined_call_operand.vmem [shape: f32[1,128], index: 7, kind: input, shape index: {}]   ;;  %s2812_s8 = inlined_call_operand.vmem [shape: bf16[32,32], index: 8, kind: input, shape index: {}]   ;;  %s2813_s9 = inlined_call_operand.hbm [shape: bf16[32,128], index: 9, kind: input, shape index: {}]   ;;  %s2814_s10 = inlined_call_operand.vmem [shape: f32[1,128], index: 10, kind: input, shape index: {}]   ;;  %s2815_s11 = inlined_call_operand.hbm [shape: bf16[32,128], index: 11, kind: input, shape index: {}]   ;;  %s2816_s12 = inlined_call_operand.vmem [shape: f32[1,128], index: 12, kind: input, shape index: {}]   ;;  %s2817_s13 = inlined_call_operand.hbm [shape: f32[8,8,128], index: 13, kind: output, shape index: {}]  }
   0x1   :  { %19 = vsyncpa [#allocation8], 0 }
   0x2   :  { %20 = vsyncpa [#allocation6], 0 }
   0x3   :  { %21 = vsyncpa [#allocation12], 0  ;;  %s40_s27 = sshll.u32 %s2806_s2, 4  ;;  %s41_s27 = int_to_ptr.hbm [resolvable:$true] %s40_s27 }
   0x4   :  { %22 = vsyncpa [#allocation5], 0  ;;  %s2428_s28 = smov [#allocation7]   ;;  %s30_s15 = sshll.u32 %s2805_s1, 4  ;;  %s31_s15 = int_to_ptr.hbm [resolvable:$true] %s30_s15 }
   0x5   :  { %s42_s29 = sshll.u32 %s2428_s28, 4  ;;  %s2429_s16 = smov 128   ;;  %s43_s29 = int_to_ptr.vmem [resolvable:$true] %s42_s29 }
   0x6   :  { %s2430_s17 = smov 8   ;;  %s2431_s18 = smov [#allocation3]  }
   0x7   :  { %48 = dma.hbm_to_vmem [thread:$0]  %s41_s27, 1024, %s43_s29, [#allocation8], %s2429_s16, %s2429_s16, %s2430_s17  }
   0x8   :  { %s32_s19 = sshll.u32 %s2431_s18, 4  ;;  %s54_s21 = sshll.u32 %s2807_s3, 4  ;;  %s33_s19 = int_to_ptr.vmem [resolvable:$true] %s32_s19  ;;  %s55_s21 = int_to_ptr.vmem [resolvable:$true] %s54_s21 }
   0x9   :  { %35 = dma.hbm_to_vmem [thread:$0]  %s31_s15, 128, %s33_s19, [#allocation4]  }
   0xa   :  { %s72_s1 = sshll.u32 %s2813_s9, 4  ;;  %s2432_s24 = smov [#allocation9]   ;;  %s73_s1 = int_to_ptr.hbm [resolvable:$true] %s72_s1 }
   0xb   :  { %57 = dma.vmem_to_smem %s55_s21, 16, %s2432_s24, [#allocation6]  }
   0xc   :  { %s2433_s25 = smov [#allocation10]   ;;  %s2434_s27 = smov 64  }
   0xd   :  { %s74_s26 = sshll.u32 %s2433_s25, 4  ;;  %s2435_s28 = smov 4   ;;  %s75_s26 = int_to_ptr.vmem [resolvable:$true] %s74_s26 }
   0xe   :  { %80 = dma.hbm_to_vmem [thread:$0]  %s73_s1, 256, %s75_s26, [#allocation8], %s2434_s27, %s2434_s27, %s2435_s28  }
   0xf   :  { %s87_s30 = sshll.u32 %s2815_s11, 4  ;;  %s2436_s14 = smov [#allocation11]   ;;  %s88_s30 = int_to_ptr.hbm [resolvable:$true] %s87_s30 }
  0x10   :  { %s89_s15 = sshll.u32 %s2436_s14, 4  ;;  %s90_s15 = int_to_ptr.vmem [resolvable:$true] %s89_s15 }
  0x11   :  { %95 = dma.hbm_to_vmem [thread:$0]  %s88_s30, 256, %s90_s15, [#allocation12], %s2434_s27, %s2434_s27, %s2435_s28  }
  0x12   :  { %2416 = dma.done.wait [#allocation4], 128  }
  0x13   :  { %2417 = vsyncadd [#allocation4], 4294967168 }
  0x14   :  { %2418 = dma.done.wait [#allocation8], 1024  }
  0x15   :  { %2419 = vsyncadd [#allocation8], 4294966272 }
  0x16   :  { %2420 = dma.done.wait [#allocation6], 16  }
  0x17   :  { %2421 = vsyncadd [#allocation6], 4294967280 }
  0x18   :  { %2422 = dma.done.wait [#allocation8], 256  }
  0x19   :  { %2423 = vsyncadd [#allocation8], 4294967040 }
  0x1a   :  { %2424 = dma.done.wait [#allocation12], 256  }
  0x1b   :  { %2425 = vsyncadd [#allocation12], 4294967040 }
  0x1c   :  { %118 = sfence }
  0x1d   :  { %v2118_v0 = vld [vmem:[%s2808_s4 + $0x8] sm:$0xff]  ;;  %v2539_v1 = vld [vmem:[%s2811_s7] ss:$0 sm:$0xff]  ;;  %vm168_vm0 = vcmask 261120   ;;  %s2438_s19 = smov 32   ;;  %s1939_s23 = sld [smem:[#allocation9 + $0x1]] }
  0x1e   :  { %187 = vmatpush.bf16.msra.mxu0 %v2118_v0  ;;  %v2117_v2 = vld [vmem:[%s2808_s4] sm:$0xff]  ;;  %243 = vrot.lane.b32.xlu0 %v2539_v1, %s2434_s27  ;;  %s2437_s4 = smov 96   ;;  %v2120_v26 = vld [vmem:[%s2809_s5 + $0x8] sm:$0xff]  ;;  %s2055_s22 = sld [smem:[#allocation9 + $0x5]] }
  0x1f   :  { %v2113_v3 = vld [vmem:[%s2804_s0] sm:$0xff]  ;;  %290 = vmatpush.bf16.msra.mxu1 %v2120_v26  ;;  %350 = vmatpush.bf16.msra.mxu2 %v2120_v26  ;;  %s2084_s25 = sld [smem:[#allocation9 + $0x6]]  ;;  %s1844_s3 = sshll.u32 %s2817_s13, 4  ;;  %s1845_s3 = int_to_ptr.hbm [resolvable:$true] %s1844_s3 }
  0x20   :  { %v2553_v4 = vld [vmem:[%s2810_s6] ss:$0 sm:$0xff]  ;;  %410 = vmatpush.bf16.msra.mxu3 %v2120_v26 }
  0x21   :  { %v2119_v27 = vld [vmem:[%s2809_s5] sm:$0xff]  ;;  %s1968_s5 = sld [smem:[#allocation9 + $0x2]] }
  0x22   :  { %188 = vmatpush.bf16.msra.mxu0 %v2117_v2  ;;  %v2114_v2 = vld [vmem:[%s2804_s0 + $0x8] sm:$0xff] }
  0x23   :  { %291 = vmatpush.bf16.msra.mxu1 %v2119_v27  ;;  %351 = vmatpush.bf16.msra.mxu2 %v2119_v27  ;;  %p867_p0 = scmp.gt.s32.totalorder %s1939_s23, 0 }
  0x24   :  { %411 = vmatpush.bf16.msra.mxu3 %v2119_v27  ;;  %p1515_p4 = scmp.gt.s32.totalorder %s2055_s22, 0 }
  0x25   :  { %1884 = vmatmul.msk.bf16.vlgmr.msra.gmra.mxu0 %vm168_vm0, %v2113_v3  ;;  %s870_s1 = scalar_select %p867_p0, 1, 0 }
  0x26   :  { %s1518_s23 = scalar_select %p1515_p4, 1, 0 }
  0x27   :  { %470 = vmatpush.bf16.msrb.mxu1 %v2120_v26  ;;  %530 = vmatpush.bf16.msrb.mxu2 %v2120_v26  ;;  %p1029_p1 = scmp.gt.s32.totalorder %s1968_s5, 0  ;;  %p1677_p5 = scmp.gt.s32.totalorder %s2084_s25, 0 }
  0x28   :  { %590 = vmatpush.bf16.msrb.mxu3 %v2120_v26 }
  0x29   :  { %s1032_s26 = scalar_select %p1029_p1, 1, 0 }
  0x2a   :  { %s1680_s5 = scalar_select %p1677_p5, 1, 0 }
  0x2b   :  { %471 = vmatpush.bf16.msrb.mxu1 %v2119_v27  ;;  %531 = vmatpush.bf16.msrb.mxu2 %v2119_v27 }
  0x2c   :  { %591 = vmatpush.bf16.msrb.mxu3 %v2119_v27 }
  0x35   :  { %1885 = vmatmul.msk.bf16.gmra.mxu0 %vm168_vm0, %v2114_v2 }
  0x90   :  { %v244_v18 = vpop.permute.xlu0 %243 }
  0xa2   :  { %v190_v5 = vpop.f32.mrf.mxu0 }
  0xa3   :  { %v191_v6 = vadd.f32 %v2553_v4, %v190_v5 }
  0xa5   :  { %v223_v7 = vadd.f32 %v2539_v1, %v191_v6 }
  0xa7   :  { %v1888_v8 = vmul.f32 -1.442695, %v223_v7 }
  0xa9   :  { %2180 = vpow2.f32 %v1888_v8 }
  0xaa   :  { %v192_v38 = vpop.f32.mrf.mxu0 }
  0xab   :  { %v193_v39 = vadd.f32 %v2553_v4, %v192_v38 }
  0xaf   :  { %v2181_v9 = vpop.eup %2180 }
  0xb0   :  { %v227_v10 = vadd.f32 1.0, %v2181_v9 }
  0xb2   :  { %2182 = vrcp.f32 %v227_v10  ;;  %v239_v14 = vand.u32 2147483648, %v227_v10  ;;  %v237_v16 = vand.u32 2147483647, %v227_v10  ;;  %vm233_vm2 = vweird.f32 %v227_v10  ;;  %v195_v8 = vpop.f32.mrf.mxu0 }
  0xb3   :  { %v196_v9 = vadd.f32 %v2553_v4, %v195_v8 }
  0xb4   :  { %v240_v19 = vor.u32 1.1754944e-38, %v239_v14  ;;  %vm238_vm4 = vcmp.eq.f32.partialorder %v237_v16, 8.507059e+37 }
  0xb8   :  { %v2183_v11 = vpop.eup %2182 }
  0xb9   :  { %v229_v12 = vmul.f32 %v2183_v11, %v227_v10  ;;  %vm234_vm1 = vweird.f32 %v2183_v11 }
  0xba   :  { %vm235_vm3 = vmor %vm233_vm2, %vm234_vm1 }
  0xbb   :  { %v230_v13 = vsub.f32 1.0, %v229_v12 }
  0xbd   :  { %v231_v15 = vmul.f32 %v2183_v11, %v230_v13 }
  0xbf   :  { %v232_v17 = vadd.f32 %v2183_v11, %v231_v15 }
  0xc1   :  { %v236_v20 = vsel %vm235_vm3, %v2183_v11, %v232_v17 }
  0xc2   :  { %v241_v21 = vsel %vm238_vm4, %v240_v19, %v236_v20 }
  0xc3   :  { %v246_v22 = vmul.f32 %v244_v18, %v241_v21  ;;  %v253_v28 = vsub.f32 1.0, %v241_v21  ;;  %v259_v30 = vmul.f32 0.0, %v241_v21 }
  0xc5   :  { %248 = vrot.lane.b32.xlu0 %v246_v22, %s2434_s27 }
 0x137   :  { %v249_v23 = vpop.permute.xlu0 %248 }
 0x138   :  { %v251_v24 = vadd.f32 %v249_v23, %v191_v6 }
 0x13a   :  { %2184 = vtanh.f32 %v251_v24 }
 0x140   :  { %v2185_v25 = vpop.eup %2184 }
 0x141   :  { %255 = vrot.lane.b32.xlu1 %v2185_v25, %s2437_s4 }
 0x1b3   :  { %v256_v29 = vpop.permute.xlu1 %255 }
 0x1b4   :  { %v258_v31 = vmul.f32 %v256_v29, %v253_v28 }
 0x1b6   :  { %v260_v32 = vadd.f32 %v259_v30, %v258_v31 }
 0x1b8   :  { %v261_v33 = vpack.c.bf16 %v260_v32, %v260_v32 }
 0x1ba   :  { %267 = vrot.lane.b32.xlu1 %v261_v33, %s2437_s4 }
 0x22c   :  { %v268_v34 = vpop.permute.xlu1 %267 }
 0x22d   :  { %1897 = vmatmul.msk.bf16.vlgmr.msra.gmra.mxu1 %vm168_vm0, %v268_v34 }
 0x22e   :  { %650 = vmatpush.bf16.msra.mxu1 %v2120_v26 }
 0x232   :  { %651 = vmatpush.bf16.msra.mxu1 %v2119_v27 }
 0x2aa   :  { %v293_v35 = vpop.f32.mrf.mxu1 }
 0x2ab   :  { %v294_v36 = vadd.f32 %v2539_v1, %v293_v35 }
 0x2ad   :  { %319 = vrot.lane.b32.xlu2 %v294_v36, %s2434_s27  ;;  %v298_v40 = vadd.f32 %v294_v36, %v193_v39 }
 0x2af   :  { %v1898_v41 = vmul.f32 -1.442695, %v298_v40 }
 0x2b1   :  { %2186 = vpow2.f32 %v1898_v41 }
 0x2b2   :  { %v295_v37 = vpop.f32.mrf.mxu1 }
 0x2b7   :  { %v2187_v42 = vpop.eup %2186 }
 0x2b8   :  { %v302_v43 = vadd.f32 1.0, %v2187_v42 }
 0x2ba   :  { %2188 = vrcp.f32 %v302_v43  ;;  %v314_v49 = vand.u32 2147483648, %v302_v43  ;;  %vm308_vm6 = vweird.f32 %v302_v43  ;;  %v312_v50 = vand.u32 2147483647, %v302_v43 }
 0x2bc   :  { %v315_v52 = vor.u32 1.1754944e-38, %v314_v49  ;;  %vm313_vm8 = vcmp.eq.f32.partialorder %v312_v50, 8.507059e+37 }
 0x2c0   :  { %v2189_v44 = vpop.eup %2188 }
 0x2c1   :  { %v304_v45 = vmul.f32 %v2189_v44, %v302_v43  ;;  %vm309_vm5 = vweird.f32 %v2189_v44 }
 0x2c2   :  { %vm310_vm7 = vmor %vm308_vm6, %vm309_vm5 }
 0x2c3   :  { %v305_v46 = vsub.f32 1.0, %v304_v45 }
 0x2c5   :  { %v306_v47 = vmul.f32 %v2189_v44, %v305_v46 }
 0x2c7   :  { %v307_v48 = vadd.f32 %v2189_v44, %v306_v47 }
 0x2c9   :  { %v311_v51 = vsel %vm310_vm7, %v2189_v44, %v307_v48 }
 0x2ca   :  { %v316_v54 = vsel %vm313_vm8, %v315_v52, %v311_v51 }
 0x2cb   :  { %v329_v59 = vsub.f32 1.0, %v316_v54  ;;  %v335_v61 = vmul.f32 %v316_v54, %v260_v32 }
 0x307   :  { %v320_v53 = vpop.permute.xlu2 %319 }
 0x308   :  { %v322_v55 = vmul.f32 %v320_v53, %v316_v54 }
 0x30a   :  { %324 = vrot.lane.b32.xlu2 %v322_v55, %s2434_s27 }
 0x364   :  { %v325_v56 = vpop.permute.xlu2 %324 }
 0x365   :  { %v327_v57 = vadd.f32 %v325_v56, %v193_v39  ;;  %v197_v39 = vpop.f32.mrf.mxu0 }
 0x366   :  { %v198_v40 = vadd.f32 %v2553_v4, %v197_v39 }
 0x367   :  { %2190 = vtanh.f32 %v327_v57 }
 0x36d   :  { %v2191_v58 = vpop.eup %2190 }
 0x36e   :  { %331 = vrot.lane.b32.xlu0 %v2191_v58, %s2437_s4 }
 0x3e0   :  { %v332_v60 = vpop.permute.xlu0 %331 }
 0x3e1   :  { %v334_v62 = vmul.f32 %v332_v60, %v329_v59 }
 0x3e3   :  { %v336_v63 = vadd.f32 %v335_v61, %v334_v62 }
 0x3e5   :  { %v337_v0 = vpack.c.bf16 %v336_v63, %v336_v63 }
 0x3e7   :  { %339 = vrot.lane.b32.xlu1 %v337_v0, %s2437_s4 }
 0x459   :  { %v340_v3 = vpop.permute.xlu1 %339 }
 0x45a   :  { %1899 = vmatmul.msk.bf16.vlgmr.msra.gmra.mxu2 %vm168_vm0, %v340_v3  ;;  %v2115_v3 = vld [vmem:[%s2804_s0 + $0x10] sm:$0xff] }
 0x45b   :  { %1886 = vmatmul.msk.bf16.gmra.mxu0 %vm168_vm0, %v2115_v3 }
 0x4dd   :  { %v353_v5 = vpop.f32.mrf.mxu2 }
 0x4de   :  { %v354_v6 = vadd.f32 %v2539_v1, %v353_v5 }
 0x4e0   :  { %379 = vrot.lane.b32.xlu2 %v354_v6, %s2434_s27  ;;  %v358_v10 = vadd.f32 %v354_v6, %v196_v9 }
 0x4e2   :  { %v1900_v11 = vmul.f32 -1.442695, %v358_v10 }
 0x4e4   :  { %2192 = vpow2.f32 %v1900_v11 }
 0x4e5   :  { %v355_v7 = vpop.f32.mrf.mxu2 }
 0x4ea   :  { %v2193_v12 = vpop.eup %2192 }
 0x4eb   :  { %v362_v13 = vadd.f32 1.0, %v2193_v12 }
 0x4ed   :  { %2194 = vrcp.f32 %v362_v13  ;;  %v374_v19 = vand.u32 2147483648, %v362_v13  ;;  %vm368_vm10 = vweird.f32 %v362_v13  ;;  %v372_v20 = vand.u32 2147483647, %v362_v13 }
 0x4ef   :  { %v375_v22 = vor.u32 1.1754944e-38, %v374_v19  ;;  %vm373_vm12 = vcmp.eq.f32.partialorder %v372_v20, 8.507059e+37 }
 0x4f3   :  { %v2195_v14 = vpop.eup %2194 }
 0x4f4   :  { %v364_v15 = vmul.f32 %v2195_v14, %v362_v13  ;;  %vm369_vm9 = vweird.f32 %v2195_v14 }
 0x4f5   :  { %vm370_vm11 = vmor %vm368_vm10, %vm369_vm9 }
 0x4f6   :  { %v365_v16 = vsub.f32 1.0, %v364_v15 }
 0x4f8   :  { %v366_v17 = vmul.f32 %v2195_v14, %v365_v16 }
 0x4fa   :  { %v367_v18 = vadd.f32 %v2195_v14, %v366_v17 }
 0x4fc   :  { %v371_v21 = vsel %vm370_vm11, %v2195_v14, %v367_v18 }
 0x4fd   :  { %v376_v24 = vsel %vm373_vm12, %v375_v22, %v371_v21 }
 0x4fe   :  { %v389_v29 = vsub.f32 1.0, %v376_v24  ;;  %v395_v31 = vmul.f32 %v376_v24, %v336_v63 }
 0x53a   :  { %v380_v23 = vpop.permute.xlu2 %379 }
 0x53b   :  { %v382_v25 = vmul.f32 %v380_v23, %v376_v24 }
 0x53d   :  { %384 = vrot.lane.b32.xlu0 %v382_v25, %s2434_s27 }
 0x5af   :  { %v385_v26 = vpop.permute.xlu0 %384 }
 0x5b0   :  { %v387_v27 = vadd.f32 %v385_v26, %v196_v9  ;;  %v200_v9 = vpop.f32.mrf.mxu0 }
 0x5b1   :  { %v201_v10 = vadd.f32 %v2553_v4, %v200_v9 }
 0x5b2   :  { %2196 = vtanh.f32 %v387_v27 }
 0x5b8   :  { %v2197_v28 = vpop.eup %2196 }
 0x5b9   :  { %391 = vrot.lane.b32.xlu1 %v2197_v28, %s2437_s4 }
 0x62b   :  { %v392_v30 = vpop.permute.xlu1 %391 }
 0x62c   :  { %v394_v32 = vmul.f32 %v392_v30, %v389_v29 }
 0x62e   :  { %v396_v33 = vadd.f32 %v395_v31, %v394_v32 }
 0x630   :  { %v397_v34 = vpack.c.bf16 %v396_v33, %v396_v33 }
 0x632   :  { %399 = vrot.lane.b32.xlu2 %v397_v34, %s2437_s4 }
 0x68c   :  { %v400_v35 = vpop.permute.xlu2 %399 }
 0x68d   :  { %1901 = vmatmul.msk.bf16.vlgmr.msra.gmra.mxu3 %vm168_vm0, %v400_v35 }
 0x710   :  { %v413_v36 = vpop.f32.mrf.mxu3 }
 0x711   :  { %v414_v37 = vadd.f32 %v2539_v1, %v413_v36 }
 0x713   :  { %439 = vrot.lane.b32.xlu0 %v414_v37, %s2434_s27  ;;  %v418_v41 = vadd.f32 %v414_v37, %v198_v40 }
 0x715   :  { %v1902_v42 = vmul.f32 -1.442695, %v418_v41 }
 0x717   :  { %2198 = vpow2.f32 %v1902_v42 }
 0x718   :  { %v415_v38 = vpop.f32.mrf.mxu3 }
 0x71d   :  { %v2199_v43 = vpop.eup %2198 }
 0x71e   :  { %v422_v44 = vadd.f32 1.0, %v2199_v43 }
 0x720   :  { %2200 = vrcp.f32 %v422_v44  ;;  %v434_v50 = vand.u32 2147483648, %v422_v44  ;;  %vm428_vm14 = vweird.f32 %v422_v44  ;;  %v432_v51 = vand.u32 2147483647, %v422_v44 }
 0x722   :  { %v435_v53 = vor.u32 1.1754944e-38, %v434_v50  ;;  %vm433_vm1 = vcmp.eq.f32.partialorder %v432_v51, 8.507059e+37 }
 0x726   :  { %v2201_v45 = vpop.eup %2200 }
 0x727   :  { %v424_v46 = vmul.f32 %v2201_v45, %v422_v44  ;;  %vm429_vm13 = vweird.f32 %v2201_v45 }
 0x728   :  { %vm430_vm15 = vmor %vm428_vm14, %vm429_vm13 }
 0x729   :  { %v425_v47 = vsub.f32 1.0, %v424_v46 }
 0x72b   :  { %v426_v48 = vmul.f32 %v2201_v45, %v425_v47 }
 0x72d   :  { %v427_v49 = vadd.f32 %v2201_v45, %v426_v48 }
 0x72f   :  { %v431_v52 = vsel %vm430_vm15, %v2201_v45, %v427_v49 }
 0x730   :  { %v436_v55 = vsel %vm433_vm1, %v435_v53, %v431_v52 }
 0x731   :  { %v449_v60 = vsub.f32 1.0, %v436_v55  ;;  %v455_v62 = vmul.f32 %v436_v55, %v396_v33 }
 0x785   :  { %v440_v54 = vpop.permute.xlu0 %439 }
 0x786   :  { %v442_v56 = vmul.f32 %v440_v54, %v436_v55 }
 0x788   :  { %444 = vrot.lane.b32.xlu1 %v442_v56, %s2434_s27 }
 0x7fa   :  { %v445_v57 = vpop.permute.xlu1 %444 }
 0x7fb   :  { %v447_v58 = vadd.f32 %v445_v57, %v198_v40  ;;  %v202_v40 = vpop.f32.mrf.mxu0 }
 0x7fc   :  { %v203_v41 = vadd.f32 %v2553_v4, %v202_v40 }
 0x7fd   :  { %2202 = vtanh.f32 %v447_v58 }
 0x803   :  { %v2203_v59 = vpop.eup %2202 }
 0x804   :  { %451 = vrot.lane.b32.xlu2 %v2203_v59, %s2437_s4 }
 0x85e   :  { %v452_v61 = vpop.permute.xlu2 %451 }
 0x85f   :  { %v454_v63 = vmul.f32 %v452_v61, %v449_v60 }
 0x861   :  { %v456_v0 = vadd.f32 %v455_v62, %v454_v63 }
 0x863   :  { %v457_v2 = vpack.c.bf16 %v456_v0, %v456_v0 }
 0x865   :  { %459 = vrot.lane.b32.xlu0 %v457_v2, %s2437_s4 }
 0x8d7   :  { %v460_v5 = vpop.permute.xlu0 %459 }
 0x8d8   :  { %1903 = vmatmul.msk.bf16.vlgmr.msrb.gmra.mxu1 %vm168_vm0, %v460_v5  ;;  %v2116_v5 = vld [vmem:[%s2804_s0 + $0x18] sm:$0xff]  ;;  %s1997_s0 = sld [smem:[#allocation9 + $0x3]] }
 0x8d9   :  { %1887 = vmatmul.msk.bf16.gmra.mxu0 %vm168_vm0, %v2116_v5 }
 0x8de   :  { %p1191_p2 = scmp.gt.s32.totalorder %s1997_s0, 0 }
 0x8e0   :  { %s1194_s14 = scalar_select %p1191_p2, 1, 0 }
 0x955   :  { %v473_v6 = vpop.f32.mrf.mxu1 }
 0x956   :  { %v474_v7 = vadd.f32 %v2539_v1, %v473_v6 }
 0x958   :  { %499 = vrot.lane.b32.xlu1 %v474_v7, %s2434_s27  ;;  %v478_v11 = vadd.f32 %v474_v7, %v201_v10 }
 0x95a   :  { %v1904_v12 = vmul.f32 -1.442695, %v478_v11 }
 0x95c   :  { %2204 = vpow2.f32 %v1904_v12 }
 0x95d   :  { %v475_v8 = vpop.f32.mrf.mxu1 }
 0x962   :  { %v2205_v13 = vpop.eup %2204 }
 0x963   :  { %v482_v14 = vadd.f32 1.0, %v2205_v13 }
 0x965   :  { %2206 = vrcp.f32 %v482_v14  ;;  %v494_v20 = vand.u32 2147483648, %v482_v14  ;;  %vm488_vm3 = vweird.f32 %v482_v14  ;;  %v492_v21 = vand.u32 2147483647, %v482_v14 }
 0x967   :  { %v495_v23 = vor.u32 1.1754944e-38, %v494_v20  ;;  %vm493_vm5 = vcmp.eq.f32.partialorder %v492_v21, 8.507059e+37 }
 0x96b   :  { %v2207_v15 = vpop.eup %2206 }
 0x96c   :  { %v484_v16 = vmul.f32 %v2207_v15, %v482_v14  ;;  %vm489_vm2 = vweird.f32 %v2207_v15 }
 0x96d   :  { %vm490_vm4 = vmor %vm488_vm3, %vm489_vm2 }
 0x96e   :  { %v485_v17 = vsub.f32 1.0, %v484_v16 }
 0x970   :  { %v486_v18 = vmul.f32 %v2207_v15, %v485_v17 }
 0x972   :  { %v487_v19 = vadd.f32 %v2207_v15, %v486_v18 }
 0x974   :  { %v491_v22 = vsel %vm490_vm4, %v2207_v15, %v487_v19 }
 0x975   :  { %v496_v25 = vsel %vm493_vm5, %v495_v23, %v491_v22 }
 0x976   :  { %v509_v30 = vsub.f32 1.0, %v496_v25  ;;  %v515_v32 = vmul.f32 %v496_v25, %v456_v0 }
 0x9ca   :  { %v500_v24 = vpop.permute.xlu1 %499 }
 0x9cb   :  { %v502_v26 = vmul.f32 %v500_v24, %v496_v25 }
 0x9cd   :  { %504 = vrot.lane.b32.xlu2 %v502_v26, %s2434_s27 }
 0xa27   :  { %v505_v27 = vpop.permute.xlu2 %504 }
 0xa28   :  { %v507_v28 = vadd.f32 %v505_v27, %v201_v10  ;;  %v205_v10 = vpop.f32.mrf.mxu0 }
 0xa29   :  { %v206_v11 = vadd.f32 %v2553_v4, %v205_v10  ;;  %v2126_v10 = vld [vmem:[#allocation11 + $0x8] sm:$0xff] }
 0xa2a   :  { %2208 = vtanh.f32 %v507_v28  ;;  %804 = vmatpush.bf16.msrb.mxu1 %v2126_v10 }
 0xa30   :  { %v2209_v29 = vpop.eup %2208 }
 0xa31   :  { %511 = vrot.lane.b32.xlu0 %v2209_v29, %s2437_s4 }
 0xaa3   :  { %v512_v31 = vpop.permute.xlu0 %511 }
 0xaa4   :  { %v514_v33 = vmul.f32 %v512_v31, %v509_v30 }
 0xaa6   :  { %v516_v34 = vadd.f32 %v515_v32, %v514_v33 }
 0xaa8   :  { %v517_v35 = vpack.c.bf16 %v516_v34, %v516_v34 }
 0xaaa   :  { %519 = vrot.lane.b32.xlu1 %v517_v35, %s2437_s4 }
 0xb1c   :  { %v520_v36 = vpop.permute.xlu1 %519 }
 0xb1d   :  { %1905 = vmatmul.msk.bf16.vlgmr.msrb.gmra.mxu2 %vm168_vm0, %v520_v36 }
 0xba0   :  { %v533_v37 = vpop.f32.mrf.mxu2 }
 0xba1   :  { %v534_v38 = vadd.f32 %v2539_v1, %v533_v37 }
 0xba3   :  { %559 = vrot.lane.b32.xlu2 %v534_v38, %s2434_s27  ;;  %v538_v42 = vadd.f32 %v534_v38, %v203_v41 }
 0xba5   :  { %v1906_v43 = vmul.f32 -1.442695, %v538_v42 }
 0xba7   :  { %2210 = vpow2.f32 %v1906_v43 }
 0xba8   :  { %v535_v39 = vpop.f32.mrf.mxu2 }
 0xbad   :  { %v2211_v44 = vpop.eup %2210 }
 0xbae   :  { %v542_v45 = vadd.f32 1.0, %v2211_v44 }
 0xbb0   :  { %2212 = vrcp.f32 %v542_v45  ;;  %v554_v51 = vand.u32 2147483648, %v542_v45  ;;  %vm548_vm7 = vweird.f32 %v542_v45  ;;  %v552_v52 = vand.u32 2147483647, %v542_v45 }
 0xbb2   :  { %v555_v54 = vor.u32 1.1754944e-38, %v554_v51  ;;  %vm553_vm9 = vcmp.eq.f32.partialorder %v552_v52, 8.507059e+37 }
 0xbb6   :  { %v2213_v46 = vpop.eup %2212 }
 0xbb7   :  { %v544_v47 = vmul.f32 %v2213_v46, %v542_v45  ;;  %vm549_vm6 = vweird.f32 %v2213_v46 }
 0xbb8   :  { %vm550_vm8 = vmor %vm548_vm7, %vm549_vm6 }
 0xbb9   :  { %v545_v48 = vsub.f32 1.0, %v544_v47 }
 0xbbb   :  { %v546_v49 = vmul.f32 %v2213_v46, %v545_v48 }
 0xbbd   :  { %v547_v50 = vadd.f32 %v2213_v46, %v546_v49 }
 0xbbf   :  { %v551_v53 = vsel %vm550_vm8, %v2213_v46, %v547_v50 }
 0xbc0   :  { %v556_v56 = vsel %vm553_vm9, %v555_v54, %v551_v53 }
 0xbc1   :  { %v569_v61 = vsub.f32 1.0, %v556_v56  ;;  %v575_v63 = vmul.f32 %v556_v56, %v516_v34 }
 0xbfd   :  { %v560_v55 = vpop.permute.xlu2 %559 }
 0xbfe   :  { %v562_v57 = vmul.f32 %v560_v55, %v556_v56 }
 0xc00   :  { %564 = vrot.lane.b32.xlu0 %v562_v57, %s2434_s27 }
 0xc72   :  { %v565_v58 = vpop.permute.xlu0 %564 }
 0xc73   :  { %v567_v59 = vadd.f32 %v565_v58, %v203_v41  ;;  %v207_v41 = vpop.f32.mrf.mxu0 }
 0xc74   :  { %v208_v42 = vadd.f32 %v2553_v4, %v207_v41 }
 0xc75   :  { %2214 = vtanh.f32 %v567_v59 }
 0xc7b   :  { %v2215_v60 = vpop.eup %2214 }
 0xc7c   :  { %571 = vrot.lane.b32.xlu1 %v2215_v60, %s2437_s4  ;;  %v2122_v60 = vld [vmem:[#allocation10 + $0x8] sm:$0xff] }
 0xc7d   :  { %737 = vmatpush.bf16.msra.mxu2 %v2122_v60  ;;  %v869_v60 = vld [vmem:[#allocation7 + $0x8] sm:$0xff] }
 0xcee   :  { %v572_v62 = vpop.permute.xlu1 %571 }
 0xcef   :  { %v574_v0 = vmul.f32 %v572_v62, %v569_v61  ;;  %v2124_v61 = vld [vmem:[%s2812_s8 + $0x8] sm:$0xff]  ;;  %v2123_v62 = vld [vmem:[%s2812_s8] sm:$0xff] }
 0xcf0   :  { %770 = vmatpush.bf16.msra.mxu3 %v2124_v61 }
 0xcf1   :  { %v576_v2 = vadd.f32 %v575_v63, %v574_v0  ;;  %v2121_v63 = vld [vmem:[#allocation10] sm:$0xff] }
 0xcf2   :  { %v698_v0 = vld [vmem:[#allocation7] sm:$0xff]  ;;  %738 = vmatpush.bf16.msra.mxu2 %v2121_v63 }
 0xcf3   :  { %v577_v3 = vpack.c.bf16 %v576_v2, %v576_v2 }
 0xcf4   :  { %771 = vmatpush.bf16.msra.mxu3 %v2123_v62 }
 0xcf5   :  { %579 = vrot.lane.b32.xlu2 %v577_v3, %s2437_s4 }
 0xd4f   :  { %v580_v6 = vpop.permute.xlu2 %579 }
 0xd50   :  { %1907 = vmatmul.msk.bf16.vlgmr.msrb.gmra.mxu3 %vm168_vm0, %v580_v6 }
 0xdd3   :  { %v593_v7 = vpop.f32.mrf.mxu3 }
 0xdd4   :  { %v594_v8 = vadd.f32 %v2539_v1, %v593_v7 }
 0xdd6   :  { %619 = vrot.lane.b32.xlu0 %v594_v8, %s2434_s27  ;;  %v598_v12 = vadd.f32 %v594_v8, %v206_v11 }
 0xdd8   :  { %v1908_v13 = vmul.f32 -1.442695, %v598_v12 }
 0xdda   :  { %2216 = vpow2.f32 %v1908_v13 }
 0xddb   :  { %v595_v9 = vpop.f32.mrf.mxu3 }
 0xde0   :  { %v2217_v14 = vpop.eup %2216 }
 0xde1   :  { %v602_v15 = vadd.f32 1.0, %v2217_v14  ;;  %v2125_v14 = vld [vmem:[#allocation11] sm:$0xff] }
 0xde2   :  { %805 = vmatpush.bf16.msrb.mxu1 %v2125_v14 }
 0xde3   :  { %2218 = vrcp.f32 %v602_v15  ;;  %v614_v21 = vand.u32 2147483648, %v602_v15  ;;  %vm608_vm11 = vweird.f32 %v602_v15  ;;  %v612_v22 = vand.u32 2147483647, %v602_v15 }
 0xde5   :  { %v615_v24 = vor.u32 1.1754944e-38, %v614_v21  ;;  %vm613_vm13 = vcmp.eq.f32.partialorder %v612_v22, 8.507059e+37  ;;  %v2646_v22 = vld [vmem:[%s2816_s12] ss:$0 sm:$0xff] }
 0xde9   :  { %v2219_v16 = vpop.eup %2218 }
 0xdea   :  { %v604_v17 = vmul.f32 %v2219_v16, %v602_v15  ;;  %vm609_vm10 = vweird.f32 %v2219_v16  ;;  %v2638_v15 = vld [vmem:[%s2814_s10] ss:$0 sm:$0xff] }
 0xdeb   :  { %vm610_vm12 = vmor %vm608_vm11, %vm609_vm10 }
 0xdec   :  { %v605_v18 = vsub.f32 1.0, %v604_v17 }
 0xdee   :  { %v606_v19 = vmul.f32 %v2219_v16, %v605_v18 }
 0xdf0   :  { %v607_v20 = vadd.f32 %v2219_v16, %v606_v19 }
 0xdf2   :  { %v611_v23 = vsel %vm610_vm12, %v2219_v16, %v607_v20 }
 0xdf3   :  { %v616_v26 = vsel %vm613_vm13, %v615_v24, %v611_v23 }
 0xdf4   :  { %v629_v31 = vsub.f32 1.0, %v616_v26  ;;  %v635_v33 = vmul.f32 %v616_v26, %v576_v2  ;;  %v744_v2 = vpack.c.bf16 %v698_v0, %v698_v0 }
 0xdf6   :  { %1928 = vmatmul.msk.bf16.vlgmr.msra.gmra.mxu3 %vm168_vm0, %v744_v2  ;;  %v2131_v2 = vld [vmem:[#allocation11] sm:$0xff] }
 0xe48   :  { %v620_v25 = vpop.permute.xlu0 %619 }
 0xe49   :  { %v622_v27 = vmul.f32 %v620_v25, %v616_v26 }
 0xe4b   :  { %624 = vrot.lane.b32.xlu1 %v622_v27, %s2434_s27 }
 0xebd   :  { %v625_v28 = vpop.permute.xlu1 %624 }
 0xebe   :  { %v627_v29 = vadd.f32 %v625_v28, %v206_v11  ;;  %v773_v11 = vpop.f32.mrf.mxu3 }
 0xec0   :  { %2220 = vtanh.f32 %v627_v29 }
 0xec6   :  { %v2221_v30 = vpop.eup %2220  ;;  %v775_v13 = vpop.f32.mrf.mxu3 }
 0xec7   :  { %631 = vrot.lane.b32.xlu2 %v2221_v30, %s2437_s4 }
 0xf21   :  { %v632_v32 = vpop.permute.xlu2 %631 }
 0xf22   :  { %v634_v34 = vmul.f32 %v632_v32, %v629_v31 }
 0xf24   :  { %v636_v35 = vadd.f32 %v635_v33, %v634_v34 }
 0xf26   :  { %v637_v36 = vpack.c.bf16 %v636_v35, %v636_v35 }
 0xf28   :  { %639 = vrot.lane.b32.xlu0 %v637_v36, %s2437_s4 }
 0xf9a   :  { %v640_v37 = vpop.permute.xlu0 %639 }
 0xf9b   :  { %1909 = vmatmul.msk.bf16.vlgmr.msra.gmra.mxu1 %vm168_vm0, %v640_v37 }
0x1018   :  { %v653_v38 = vpop.f32.mrf.mxu1 }
0x1019   :  { %v654_v39 = vadd.f32 %v2539_v1, %v653_v38 }
0x101b   :  { %679 = vrot.lane.b32.xlu1 %v654_v39, %s2434_s27  ;;  %v658_v43 = vadd.f32 %v654_v39, %v208_v42 }
0x101d   :  { %v1910_v44 = vmul.f32 -1.442695, %v658_v43 }
0x101f   :  { %2222 = vpow2.f32 %v1910_v44 }
0x1020   :  { %v655_v40 = vpop.f32.mrf.mxu1 }
0x1025   :  { %v2223_v45 = vpop.eup %2222 }
0x1026   :  { %v662_v46 = vadd.f32 1.0, %v2223_v45 }
0x1028   :  { %2224 = vrcp.f32 %v662_v46  ;;  %v674_v52 = vand.u32 2147483648, %v662_v46  ;;  %vm668_vm15 = vweird.f32 %v662_v46  ;;  %v672_v1 = vand.u32 2147483647, %v662_v46 }
0x102a   :  { %v675_v54 = vor.u32 1.1754944e-38, %v674_v52  ;;  %vm673_vm2 = vcmp.eq.f32.partialorder %v672_v1, 8.507059e+37 }
0x102e   :  { %v2225_v47 = vpop.eup %2224 }
0x102f   :  { %v664_v48 = vmul.f32 %v2225_v47, %v662_v46  ;;  %vm669_vm14 = vweird.f32 %v2225_v47  ;;  %v2128_v46 = vld [vmem:[#allocation10 + $0x8] sm:$0xff] }
0x1030   :  { %vm670_vm1 = vmor %vm668_vm15, %vm669_vm14  ;;  %903 = vmatpush.bf16.msrb.mxu2 %v2128_v46  ;;  %v2136_v46 = vld [vmem:[%s2812_s8 + $0x8] sm:$0xff] }
0x1031   :  { %v665_v49 = vsub.f32 1.0, %v664_v48 }
0x1033   :  { %v666_v50 = vmul.f32 %v2225_v47, %v665_v49 }
0x1035   :  { %v667_v51 = vadd.f32 %v2225_v47, %v666_v50 }
0x1037   :  { %v671_v53 = vsel %vm670_vm1, %v2225_v47, %v667_v51  ;;  %v2127_v47 = vld [vmem:[#allocation10] sm:$0xff] }
0x1038   :  { %v676_v55 = vsel %vm673_vm2, %v675_v54, %v671_v53  ;;  %904 = vmatpush.bf16.msrb.mxu2 %v2127_v47  ;;  %v2135_v47 = vld [vmem:[%s2812_s8] sm:$0xff] }
0x1039   :  { %v689_v3 = vsub.f32 1.0, %v676_v55  ;;  %v695_v6 = vmul.f32 %v676_v55, %v636_v35 }
0x108d   :  { %v680_v4 = vpop.permute.xlu1 %679 }
0x108e   :  { %v682_v56 = vmul.f32 %v680_v4, %v676_v55  ;;  %v2130_v55 = vld [vmem:[%s2812_s8 + $0x8] sm:$0xff] }
0x108f   :  { %936 = vmatpush.bf16.msrb.mxu3 %v2130_v55 }
0x1090   :  { %684 = vrot.lane.b32.xlu2 %v682_v56, %s2434_s27  ;;  %v2129_v56 = vld [vmem:[%s2812_s8] sm:$0xff] }
0x1093   :  { %937 = vmatpush.bf16.msrb.mxu3 %v2129_v56 }
0x10ea   :  { %v685_v57 = vpop.permute.xlu2 %684 }
0x10eb   :  { %v687_v58 = vadd.f32 %v685_v57, %v208_v42  ;;  %v699_v42 = vld [vmem:[#allocation3] sm:$0xff] }
0x10ec   :  { %v2132_v57 = vld [vmem:[#allocation11 + $0x8] sm:$0xff] }
0x10ed   :  { %2226 = vtanh.f32 %v687_v58  ;;  %970 = vmatpush.bf16.msrb.mxu0 %v2132_v57  ;;  %v2137_v57 = vld [vmem:[#allocation11] sm:$0xff] }
0x10f1   :  { %971 = vmatpush.bf16.msrb.mxu0 %v2131_v2 }
0x10f3   :  { %v2227_v59 = vpop.eup %2226 }
0x10f4   :  { %691 = vrot.lane.b32.xlu0 %v2227_v59, %s2437_s4  ;;  %v871_v59 = vstv %s870_s1 }
0x10f5   :  { %vm872_vm7 = vcmp.eq.s32.totalorder %v871_v59, 1 }
0x1166   :  { %v692_v5 = vpop.permute.xlu0 %691 }
0x1167   :  { %v694_v7 = vmul.f32 %v692_v5, %v689_v3 }
0x1169   :  { %v696_v8 = vadd.f32 %v695_v6, %v694_v7 }
0x116b   :  { %v708_v9 = vpack.c.bf16 %v696_v8, %v696_v8 }
0x116d   :  { %714 = vrot.lane.b32.xlu1 %v708_v9, %s2437_s4 }
0x11df   :  { %v715_v12 = vpop.permute.xlu1 %714 }
0x11e0   :  { %1919 = vmatmul.msk.bf16.vlgmr.msra.gmra.mxu2 %vm168_vm0, %v715_v12 }
0x11e1   :  { %1098 = vmatpush.bf16.msra.mxu2 %v2136_v46 }
0x11e5   :  { %1099 = vmatpush.bf16.msra.mxu2 %v2135_v47  ;;  %v2143_v47 = vld [vmem:[#allocation11] sm:$0xff] }
0x1263   :  { %v740_v16 = vpop.f32.mrf.mxu2 }
0x1264   :  { %v741_v17 = vadd.f32 %v2638_v15, %v740_v16 }
0x1266   :  { %v774_v18 = vadd.f32 %v773_v11, %v741_v17  ;;  %832 = vrot.lane.b32.xlu2 %v741_v17, %s2434_s27 }
0x1268   :  { %2228 = vtanh.f32 %v774_v18 }
0x126b   :  { %v742_v19 = vpop.f32.mrf.mxu2 }
0x126e   :  { %v2229_v20 = vpop.eup %2228  ;;  %849 = vrot.lane.b32.xlu2 %v696_v8, %s2438_s19  ;;  %s2026_s19 = sld [smem:[#allocation9 + $0x4]] }
0x126f   :  { %v778_v21 = vpack.c.bf16 %v2229_v20, %v2229_v20 }
0x1271   :  { %1937 = vmatmul.msk.bf16.vlgmr.msrb.gmra.mxu1 %vm168_vm0, %v778_v21 }
0x1274   :  { %p1353_p3 = scmp.gt.s32.totalorder %s2026_s19, 0 }
0x1276   :  { %s1356_s20 = scalar_select %p1353_p3, 1, 0 }
0x12c0   :  { %v833_v39 = vpop.permute.xlu2 %832 }
0x12c8   :  { %v850_v49 = vpop.permute.xlu2 %849 }
0x12ee   :  { %v807_v23 = vpop.f32.mrf.mxu1 }
0x12ef   :  { %v808_v24 = vadd.f32 %v2646_v22, %v807_v23 }
0x12f1   :  { %v811_v25 = vadd.f32 %v808_v24, %v741_v17 }
0x12f3   :  { %v1938_v26 = vmul.f32 -1.442695, %v811_v25 }
0x12f5   :  { %2230 = vpow2.f32 %v1938_v26 }
0x12f6   :  { %v809_v27 = vpop.f32.mrf.mxu1 }
0x12fb   :  { %v2231_v28 = vpop.eup %2230 }
0x12fc   :  { %v815_v29 = vadd.f32 1.0, %v2231_v28 }
0x12fe   :  { %2232 = vrcp.f32 %v815_v29  ;;  %v827_v33 = vand.u32 2147483648, %v815_v29  ;;  %v825_v35 = vand.u32 2147483647, %v815_v29  ;;  %vm821_vm4 = vweird.f32 %v815_v29 }
0x1300   :  { %v828_v37 = vor.u32 1.1754944e-38, %v827_v33  ;;  %vm826_vm6 = vcmp.eq.f32.partialorder %v825_v35, 8.507059e+37 }
0x1304   :  { %v2233_v30 = vpop.eup %2232 }
0x1305   :  { %v817_v31 = vmul.f32 %v2233_v30, %v815_v29  ;;  %vm822_vm3 = vweird.f32 %v2233_v30 }
0x1306   :  { %vm823_vm5 = vmor %vm821_vm4, %vm822_vm3 }
0x1307   :  { %v818_v32 = vsub.f32 1.0, %v817_v31 }
0x1309   :  { %v819_v34 = vmul.f32 %v2233_v30, %v818_v32 }
0x130b   :  { %v820_v36 = vadd.f32 %v2233_v30, %v819_v34 }
0x130d   :  { %v824_v38 = vsel %vm823_vm5, %v2233_v30, %v820_v36  ;;  %v2134_v36 = vld [vmem:[#allocation10 + $0x8] sm:$0xff] }
0x130e   :  { %v829_v40 = vsel %vm826_vm6, %v828_v37, %v824_v38  ;;  %1065 = vmatpush.bf16.msra.mxu1 %v2134_v36  ;;  %v2133_v37 = vld [vmem:[#allocation10] sm:$0xff]  ;;  %v2141_v36 = vld [vmem:[%s2812_s8] sm:$0xff] }
0x130f   :  { %v835_v41 = vmul.f32 %v833_v39, %v829_v40  ;;  %v842_v48 = vsub.f32 1.0, %v829_v40  ;;  %v852_v51 = vmul.f32 %v850_v49, %v829_v40  ;;  %v1033_v49 = vstv %s1032_s26 }
0x1310   :  { %vm1034_vm12 = vcmp.eq.s32.totalorder %v1033_v49, 1 }
0x1311   :  { %837 = vrot.lane.b32.xlu0 %v835_v41, %s2434_s27 }
0x1312   :  { %1066 = vmatpush.bf16.msra.mxu1 %v2133_v37 }
0x1319   :  { %855 = vrot.lane.b32.xlu0 %v699_v42, %s2434_s27 }
0x1383   :  { %v838_v43 = vpop.permute.xlu0 %837 }
0x1384   :  { %v840_v44 = vadd.f32 %v838_v43, %v808_v24 }
0x1386   :  { %2234 = vtanh.f32 %v840_v44 }
0x138b   :  { %v856_v1 = vpop.permute.xlu0 %855 }
0x138c   :  { %v2235_v45 = vpop.eup %2234 }
0x138d   :  { %844 = vrot.lane.b32.xlu1 %v2235_v45, %s2437_s4 }
0x13ff   :  { %v845_v50 = vpop.permute.xlu1 %844 }
0x1400   :  { %v847_v52 = vmul.f32 %v845_v50, %v842_v48  ;;  %v1031_v50 = vld [vmem:[#allocation7 + $0x10] sm:$0xff] }
0x1402   :  { %v2652_v53 = vadd.f32 %v852_v51, %v847_v52 }
0x1404   :  { %v858_v54 = vadd.f32 %v856_v1, %v2652_v53  ;;  %v874_v4 = vpack.c.bf16 %v2652_v53, %v2652_v53 }
0x1406   :  { %880 = vrot.lane.b32.xlu2 %v874_v4, %s2434_s27  ;;  %860 = vrot.lane.b32.xlu1 %v858_v54, %s2434_s27  ;;  %v2138_v54 = vld [vmem:[#allocation11 + $0x8] sm:$0xff] }
0x1407   :  { %1132 = vmatpush.bf16.msra.mxu3 %v2138_v54 }
0x140b   :  { %1133 = vmatpush.bf16.msra.mxu3 %v2137_v57 }
0x1460   :  { %v881_v58 = vpop.permute.xlu2 %880 }
0x1461   :  { %1948 = vmatmul.msk.bf16.vlgmr.msrb.gmra.mxu2 %vm168_vm0, %v881_v58 }
0x1478   :  { %v861_v61 = vpop.permute.xlu1 %860 }
0x1479   :  { %v863_v62 = vsel %vm168_vm0, %v861_v61, 0.0  ;;  %v873_v63 = vsel %vm872_vm7, %v869_v60, %v861_v61 }
0x147a   :  { %865 = vst [vmem:[#allocation13 + $0x8] sm:$0xff] %v863_v62  ;;  %v910_v0 = vpack.c.bf16 %v873_v63, %v873_v63 }
0x147c   :  { %1957 = vmatmul.msk.bf16.vlgmr.msrb.gmra.mxu3 %vm168_vm0, %v910_v0 }
0x14e4   :  { %v906_v3 = vpop.f32.mrf.mxu2 }
0x14e5   :  { %v907_v5 = vadd.f32 %v2638_v15, %v906_v3 }
0x14e7   :  { %998 = vrot.lane.b32.xlu0 %v907_v5, %s2434_s27 }
0x14ec   :  { %v908_v6 = vpop.f32.mrf.mxu2 }
0x14ef   :  { %1017 = vrot.lane.b32.xlu0 %v873_v63, %s2434_s27 }
0x14ff   :  { %v939_v7 = vpop.f32.mrf.mxu3 }
0x1500   :  { %v940_v8 = vadd.f32 %v939_v7, %v907_v5 }
0x1502   :  { %2236 = vtanh.f32 %v940_v8 }
0x1507   :  { %v941_v9 = vpop.f32.mrf.mxu3 }
0x1508   :  { %v2237_v10 = vpop.eup %2236 }
0x1509   :  { %v944_v11 = vpack.c.bf16 %v2237_v10, %v2237_v10 }
0x150b   :  { %1966 = vmatmul.msk.bf16.vlgmr.msrb.gmra.mxu0 %vm168_vm0, %v944_v11 }
0x1559   :  { %v999_v30 = vpop.permute.xlu0 %998 }
0x1561   :  { %v1018_v43 = vpop.permute.xlu0 %1017 }
0x1588   :  { %v973_v12 = vpop.f32.mrf.mxu0 }
0x1589   :  { %v974_v13 = vadd.f32 %v2646_v22, %v973_v12 }
0x158b   :  { %v977_v14 = vadd.f32 %v974_v13, %v907_v5 }
0x158d   :  { %v1967_v16 = vmul.f32 -1.442695, %v977_v14 }
0x158f   :  { %2238 = vpow2.f32 %v1967_v16 }
0x1590   :  { %v975_v17 = vpop.f32.mrf.mxu0 }
0x1595   :  { %v2239_v18 = vpop.eup %2238 }
0x1596   :  { %v981_v19 = vadd.f32 1.0, %v2239_v18 }
0x1598   :  { %2240 = vrcp.f32 %v981_v19  ;;  %v993_v24 = vand.u32 2147483648, %v981_v19  ;;  %v991_v26 = vand.u32 2147483647, %v981_v19  ;;  %vm987_vm9 = vweird.f32 %v981_v19 }
0x159a   :  { %v994_v28 = vor.u32 1.1754944e-38, %v993_v24  ;;  %vm992_vm11 = vcmp.eq.f32.partialorder %v991_v26, 8.507059e+37  ;;  %v2139_v26 = vld [vmem:[#allocation10] sm:$0xff] }
0x159e   :  { %v2241_v20 = vpop.eup %2240 }
0x159f   :  { %v983_v21 = vmul.f32 %v2241_v20, %v981_v19  ;;  %vm988_vm8 = vweird.f32 %v2241_v20 }
0x15a0   :  { %vm989_vm10 = vmor %vm987_vm9, %vm988_vm8 }
0x15a1   :  { %v984_v23 = vsub.f32 1.0, %v983_v21 }
0x15a3   :  { %v985_v25 = vmul.f32 %v2241_v20, %v984_v23 }
0x15a5   :  { %v986_v27 = vadd.f32 %v2241_v20, %v985_v25  ;;  %v2140_v25 = vld [vmem:[#allocation10 + $0x8] sm:$0xff] }
0x15a6   :  { %1227 = vmatpush.bf16.msra.mxu0 %v2140_v25  ;;  %v2145_v25 = vld [vmem:[#allocation10] sm:$0xff] }
0x15a7   :  { %v990_v29 = vsel %vm989_vm10, %v2241_v20, %v986_v27 }
0x15a8   :  { %v995_v31 = vsel %vm992_vm11, %v994_v28, %v990_v29 }
0x15a9   :  { %v1001_v32 = vmul.f32 %v999_v30, %v995_v31  ;;  %v1008_v38 = vsub.f32 1.0, %v995_v31  ;;  %v1014_v40 = vmul.f32 %v995_v31, %v2652_v53 }
0x15aa   :  { %1228 = vmatpush.bf16.msra.mxu0 %v2139_v26  ;;  %v1357_v26 = vstv %s1356_s20 }
0x15ab   :  { %1003 = vrot.lane.b32.xlu1 %v1001_v32, %s2434_s27  ;;  %vm1358_vm7 = vcmp.eq.s32.totalorder %v1357_v26, 1 }
0x161d   :  { %v1004_v33 = vpop.permute.xlu1 %1003 }
0x161e   :  { %v1006_v34 = vadd.f32 %v1004_v33, %v974_v13 }
0x1620   :  { %2242 = vtanh.f32 %v1006_v34 }
0x1626   :  { %v2243_v35 = vpop.eup %2242 }
0x1627   :  { %1010 = vrot.lane.b32.xlu2 %v2243_v35, %s2437_s4  ;;  %v2142_v35 = vld [vmem:[%s2812_s8 + $0x8] sm:$0xff] }
0x1628   :  { %1260 = vmatpush.bf16.msrb.mxu1 %v2142_v35  ;;  %v2149_v35 = vld [vmem:[#allocation11] sm:$0xff] }
0x162c   :  { %1261 = vmatpush.bf16.msrb.mxu1 %v2141_v36 }
0x1681   :  { %v1011_v39 = vpop.permute.xlu2 %1010 }
0x1682   :  { %v1013_v41 = vmul.f32 %v1011_v39, %v1008_v38  ;;  %v1195_v38 = vstv %s1194_s14  ;;  %v1193_v39 = vld [vmem:[#allocation7 + $0x18] sm:$0xff] }
0x1683   :  { %vm1196_vm2 = vcmp.eq.s32.totalorder %v1195_v38, 1 }
0x1684   :  { %v2676_v42 = vadd.f32 %v1014_v40, %v1013_v41 }
0x1686   :  { %v1036_v44 = vpack.c.bf16 %v2676_v42, %v2676_v42  ;;  %v1020_v45 = vadd.f32 %v1018_v43, %v2676_v42 }
0x1688   :  { %1042 = vrot.lane.b32.xlu2 %v1036_v44, %s2434_s27  ;;  %1022 = vrot.lane.b32.xlu1 %v1020_v45, %s2434_s27  ;;  %v2144_v44 = vld [vmem:[#allocation11 + $0x8] sm:$0xff] }
0x1689   :  { %1294 = vmatpush.bf16.msrb.mxu2 %v2144_v44 }
0x168d   :  { %1295 = vmatpush.bf16.msrb.mxu2 %v2143_v47 }
0x16e2   :  { %v1043_v48 = vpop.permute.xlu2 %1042 }
0x16e3   :  { %1977 = vmatmul.msk.bf16.vlgmr.msra.gmra.mxu1 %vm168_vm0, %v1043_v48 }
0x16fa   :  { %v1023_v51 = vpop.permute.xlu1 %1022 }
0x16fb   :  { %v1025_v52 = vsel %vm168_vm0, %v1023_v51, 0.0  ;;  %v1035_v1 = vsel %vm1034_vm12, %v1031_v50, %v1023_v51 }
0x16fc   :  { %1027 = vst [vmem:[#allocation13 + $0x10] sm:$0xff] %v1025_v52  ;;  %v1072_v53 = vpack.c.bf16 %v1035_v1, %v1035_v1 }
0x16fe   :  { %1986 = vmatmul.msk.bf16.vlgmr.msra.gmra.mxu2 %vm168_vm0, %v1072_v53 }
0x1760   :  { %v1068_v4 = vpop.f32.mrf.mxu1 }
0x1761   :  { %v1069_v55 = vadd.f32 %v2638_v15, %v1068_v4 }
0x1763   :  { %1160 = vrot.lane.b32.xlu0 %v1069_v55, %s2434_s27 }
0x1768   :  { %v1070_v56 = vpop.f32.mrf.mxu1 }
0x176b   :  { %1179 = vrot.lane.b32.xlu0 %v1035_v1, %s2434_s27 }
0x1781   :  { %v1101_v58 = vpop.f32.mrf.mxu2 }
0x1782   :  { %v1102_v59 = vadd.f32 %v1101_v58, %v1069_v55 }
0x1784   :  { %2244 = vtanh.f32 %v1102_v59 }
0x1789   :  { %v1103_v60 = vpop.f32.mrf.mxu2 }
0x178a   :  { %v2245_v61 = vpop.eup %2244 }
0x178b   :  { %v1106_v62 = vpack.c.bf16 %v2245_v61, %v2245_v61 }
0x178d   :  { %1995 = vmatmul.msk.bf16.vlgmr.msra.gmra.mxu3 %vm168_vm0, %v1106_v62 }
0x17d5   :  { %v1161_v18 = vpop.permute.xlu0 %1160 }
0x17dd   :  { %v1180_v32 = vpop.permute.xlu0 %1179 }
0x1810   :  { %v1135_v63 = vpop.f32.mrf.mxu3 }
0x1811   :  { %v1136_v0 = vadd.f32 %v2646_v22, %v1135_v63 }
0x1813   :  { %v1139_v2 = vadd.f32 %v1136_v0, %v1069_v55 }
0x1815   :  { %v1996_v3 = vmul.f32 -1.442695, %v1139_v2 }
0x1817   :  { %2246 = vpow2.f32 %v1996_v3 }
0x1818   :  { %v1137_v5 = vpop.f32.mrf.mxu3 }
0x181d   :  { %v2247_v6 = vpop.eup %2246 }
0x181e   :  { %v1143_v7 = vadd.f32 1.0, %v2247_v6 }
0x1820   :  { %2248 = vrcp.f32 %v1143_v7  ;;  %v1155_v11 = vand.u32 2147483648, %v1143_v7  ;;  %v1153_v13 = vand.u32 2147483647, %v1143_v7  ;;  %vm1149_vm14 = vweird.f32 %v1143_v7 }
0x1822   :  { %v1156_v16 = vor.u32 1.1754944e-38, %v1155_v11  ;;  %vm1154_vm1 = vcmp.eq.f32.partialorder %v1153_v13, 8.507059e+37 }
0x1826   :  { %v2249_v8 = vpop.eup %2248 }
0x1827   :  { %v1145_v9 = vmul.f32 %v2249_v8, %v1143_v7  ;;  %vm1150_vm13 = vweird.f32 %v2249_v8 }
0x1828   :  { %vm1151_vm15 = vmor %vm1149_vm14, %vm1150_vm13 }
0x1829   :  { %v1146_v10 = vsub.f32 1.0, %v1145_v9 }
0x182b   :  { %v1147_v12 = vmul.f32 %v2249_v8, %v1146_v10 }
0x182d   :  { %v1148_v14 = vadd.f32 %v2249_v8, %v1147_v12  ;;  %v2148_v12 = vld [vmem:[%s2812_s8 + $0x8] sm:$0xff] }
0x182e   :  { %1422 = vmatpush.bf16.msrb.mxu0 %v2148_v12  ;;  %v2153_v12 = vld [vmem:[%s2812_s8] sm:$0xff] }
0x182f   :  { %v1152_v17 = vsel %vm1151_vm15, %v2249_v8, %v1148_v14 }
0x1830   :  { %v1157_v19 = vsel %vm1154_vm1, %v1156_v16, %v1152_v17 }
0x1831   :  { %v1163_v20 = vmul.f32 %v1161_v18, %v1157_v19  ;;  %v1170_v27 = vsub.f32 1.0, %v1157_v19  ;;  %v1176_v29 = vmul.f32 %v1157_v19, %v2676_v42 }
0x1833   :  { %1165 = vrot.lane.b32.xlu1 %v1163_v20, %s2434_s27 }
0x18a5   :  { %v1166_v21 = vpop.permute.xlu1 %1165 }
0x18a6   :  { %v1168_v23 = vadd.f32 %v1166_v21, %v1136_v0 }
0x18a8   :  { %2250 = vtanh.f32 %v1168_v23  ;;  %v2147_v23 = vld [vmem:[%s2812_s8] sm:$0xff] }
0x18a9   :  { %1423 = vmatpush.bf16.msrb.mxu0 %v2147_v23 }
0x18ae   :  { %v2251_v24 = vpop.eup %2250 }
0x18af   :  { %1172 = vrot.lane.b32.xlu2 %v2251_v24, %s2437_s4  ;;  %v2146_v24 = vld [vmem:[#allocation10 + $0x8] sm:$0xff] }
0x18b0   :  { %1389 = vmatpush.bf16.msrb.mxu3 %v2146_v24 }
0x18b4   :  { %1390 = vmatpush.bf16.msrb.mxu3 %v2145_v25  ;;  %v2155_v25 = vld [vmem:[#allocation11] sm:$0xff] }
0x1909   :  { %v1173_v28 = vpop.permute.xlu2 %1172 }
0x190a   :  { %v1175_v30 = vmul.f32 %v1173_v28, %v1170_v27  ;;  %v1355_v27 = vld [vmem:[#allocation7 + $0x20] sm:$0xff] }
0x190c   :  { %v2700_v31 = vadd.f32 %v1176_v29, %v1175_v30 }
0x190e   :  { %v1198_v33 = vpack.c.bf16 %v2700_v31, %v2700_v31  ;;  %v1182_v34 = vadd.f32 %v1180_v32, %v2700_v31 }
0x1910   :  { %1204 = vrot.lane.b32.xlu2 %v1198_v33, %s2434_s27  ;;  %1184 = vrot.lane.b32.xlu1 %v1182_v34, %s2434_s27  ;;  %v2150_v33 = vld [vmem:[#allocation11 + $0x8] sm:$0xff] }
0x1911   :  { %1456 = vmatpush.bf16.msra.mxu1 %v2150_v33 }
0x1915   :  { %1457 = vmatpush.bf16.msra.mxu1 %v2149_v35 }
0x196a   :  { %v1205_v37 = vpop.permute.xlu2 %1204 }
0x196b   :  { %2006 = vmatmul.msk.bf16.vlgmr.msra.gmra.mxu0 %vm168_vm0, %v1205_v37 }
0x1982   :  { %v1185_v40 = vpop.permute.xlu1 %1184 }
0x1983   :  { %v1187_v41 = vsel %vm168_vm0, %v1185_v40, 0.0  ;;  %v1197_v42 = vsel %vm1196_vm2, %v1193_v39, %v1185_v40 }
0x1984   :  { %1189 = vst [vmem:[#allocation13 + $0x18] sm:$0xff] %v1187_v41  ;;  %v1234_v43 = vpack.c.bf16 %v1197_v42, %v1197_v42 }
0x1986   :  { %2015 = vmatmul.msk.bf16.vlgmr.msrb.gmra.mxu1 %vm168_vm0, %v1234_v43 }
0x19e8   :  { %v1230_v45 = vpop.f32.mrf.mxu0 }
0x19e9   :  { %v1231_v46 = vadd.f32 %v2638_v15, %v1230_v45 }
0x19eb   :  { %1322 = vrot.lane.b32.xlu0 %v1231_v46, %s2434_s27 }
0x19f0   :  { %v1232_v48 = vpop.f32.mrf.mxu0 }
0x19f3   :  { %1341 = vrot.lane.b32.xlu0 %v1197_v42, %s2434_s27 }
0x1a03   :  { %v1263_v49 = vpop.f32.mrf.mxu1 }
0x1a04   :  { %v1264_v50 = vadd.f32 %v1263_v49, %v1231_v46 }
0x1a06   :  { %2252 = vtanh.f32 %v1264_v50 }
0x1a0b   :  { %v1265_v51 = vpop.f32.mrf.mxu1 }
0x1a0c   :  { %v2253_v52 = vpop.eup %2252 }
0x1a0d   :  { %v1268_v1 = vpack.c.bf16 %v2253_v52, %v2253_v52 }
0x1a0f   :  { %2024 = vmatmul.msk.bf16.vlgmr.msrb.gmra.mxu2 %vm168_vm0, %v1268_v1 }
0x1a5d   :  { %v1323_v6 = vpop.permute.xlu0 %1322 }
0x1a65   :  { %v1342_v19 = vpop.permute.xlu0 %1341 }
0x1a92   :  { %v1297_v53 = vpop.f32.mrf.mxu2 }
0x1a93   :  { %v1298_v54 = vadd.f32 %v2646_v22, %v1297_v53 }
0x1a95   :  { %v1301_v4 = vadd.f32 %v1298_v54, %v1231_v46 }
0x1a97   :  { %v2025_v55 = vmul.f32 -1.442695, %v1301_v4 }
0x1a99   :  { %2254 = vpow2.f32 %v2025_v55 }
0x1a9a   :  { %v1299_v56 = vpop.f32.mrf.mxu2 }
0x1a9f   :  { %v2255_v57 = vpop.eup %2254 }
0x1aa0   :  { %v1305_v58 = vadd.f32 1.0, %v2255_v57 }
0x1aa2   :  { %2256 = vrcp.f32 %v1305_v58  ;;  %v1317_v62 = vand.u32 2147483648, %v1305_v58  ;;  %v1315_v0 = vand.u32 2147483647, %v1305_v58  ;;  %vm1311_vm4 = vweird.f32 %v1305_v58 }
0x1aa4   :  { %v1318_v3 = vor.u32 1.1754944e-38, %v1317_v62  ;;  %vm1316_vm6 = vcmp.eq.f32.partialorder %v1315_v0, 8.507059e+37  ;;  %v2151_v0 = vld [vmem:[#allocation10] sm:$0xff] }
0x1aa8   :  { %v2257_v59 = vpop.eup %2256 }
0x1aa9   :  { %v1307_v60 = vmul.f32 %v2257_v59, %v1305_v58  ;;  %vm1312_vm3 = vweird.f32 %v2257_v59 }
0x1aaa   :  { %vm1313_vm5 = vmor %vm1311_vm4, %vm1312_vm3 }
0x1aab   :  { %v1308_v61 = vsub.f32 1.0, %v1307_v60 }
0x1aad   :  { %v1309_v63 = vmul.f32 %v2257_v59, %v1308_v61 }
0x1aaf   :  { %v1310_v2 = vadd.f32 %v2257_v59, %v1309_v63  ;;  %v2152_v63 = vld [vmem:[#allocation10 + $0x8] sm:$0xff] }
0x1ab0   :  { %1551 = vmatpush.bf16.msra.mxu2 %v2152_v63  ;;  %v2159_v63 = vld [vmem:[%s2812_s8] sm:$0xff] }
0x1ab1   :  { %v1314_v5 = vsel %vm1313_vm5, %v2257_v59, %v1310_v2 }
0x1ab2   :  { %v1319_v7 = vsel %vm1316_vm6, %v1318_v3, %v1314_v5 }
0x1ab3   :  { %v1325_v8 = vmul.f32 %v1323_v6, %v1319_v7  ;;  %v1332_v13 = vsub.f32 1.0, %v1319_v7  ;;  %v1338_v16 = vmul.f32 %v1319_v7, %v2700_v31 }
0x1ab4   :  { %1552 = vmatpush.bf16.msra.mxu2 %v2151_v0 }
0x1ab5   :  { %1327 = vrot.lane.b32.xlu1 %v1325_v8, %s2434_s27 }
0x1b27   :  { %v1328_v9 = vpop.permute.xlu1 %1327 }
0x1b28   :  { %v1330_v10 = vadd.f32 %v1328_v9, %v1298_v54 }
0x1b2a   :  { %2258 = vtanh.f32 %v1330_v10 }
0x1b30   :  { %v2259_v11 = vpop.eup %2258 }
0x1b31   :  { %1334 = vrot.lane.b32.xlu2 %v2259_v11, %s2437_s4  ;;  %v2154_v11 = vld [vmem:[%s2812_s8 + $0x8] sm:$0xff] }
0x1b32   :  { %1584 = vmatpush.bf16.msra.mxu3 %v2154_v11 }
0x1b36   :  { %1585 = vmatpush.bf16.msra.mxu3 %v2153_v12 }
0x1b8b   :  { %v1335_v14 = vpop.permute.xlu2 %1334 }
0x1b8c   :  { %v1337_v17 = vmul.f32 %v1335_v14, %v1332_v13  ;;  %v1519_v14 = vstv %s1518_s23 }
0x1b8d   :  { %vm1520_vm12 = vcmp.eq.s32.totalorder %v1519_v14, 1 }
0x1b8e   :  { %v2727_v18 = vadd.f32 %v1338_v16, %v1337_v17  ;;  %v1517_v16 = vld [vmem:[#allocation7 + $0x28] sm:$0xff] }
0x1b90   :  { %v1360_v20 = vpack.c.bf16 %v2727_v18, %v2727_v18  ;;  %v1344_v21 = vadd.f32 %v1342_v19, %v2727_v18 }
0x1b92   :  { %1366 = vrot.lane.b32.xlu1 %v1360_v20, %s2434_s27  ;;  %1346 = vrot.lane.b32.xlu2 %v1344_v21, %s2434_s27  ;;  %v2156_v21 = vld [vmem:[#allocation11 + $0x8] sm:$0xff] }
0x1b93   :  { %1618 = vmatpush.bf16.msra.mxu0 %v2156_v21 }
0x1b97   :  { %1619 = vmatpush.bf16.msra.mxu0 %v2155_v25 }
0x1bec   :  { %v1347_v28 = vpop.permute.xlu2 %1346 }
0x1bed   :  { %v1349_v29 = vsel %vm168_vm0, %v1347_v28, 0.0  ;;  %v1359_v30 = vsel %vm1358_vm7, %v1355_v27, %v1347_v28 }
0x1bee   :  { %1351 = vst [vmem:[#allocation13 + $0x20] sm:$0xff] %v1349_v29  ;;  %v1396_v31 = vpack.c.bf16 %v1359_v30, %v1359_v30 }
0x1bf0   :  { %2044 = vmatmul.msk.bf16.vlgmr.msrb.gmra.mxu0 %vm168_vm0, %v1396_v31 }
0x1c04   :  { %v1367_v32 = vpop.permute.xlu1 %1366 }
0x1c05   :  { %2035 = vmatmul.msk.bf16.vlgmr.msrb.gmra.mxu3 %vm168_vm0, %v1367_v32 }
0x1c6d   :  { %v1425_v34 = vpop.f32.mrf.mxu0 }
0x1c75   :  { %v1427_v36 = vpop.f32.mrf.mxu0 }
0x1c88   :  { %v1392_v37 = vpop.f32.mrf.mxu3 }
0x1c89   :  { %v1393_v38 = vadd.f32 %v2638_v15, %v1392_v37 }
0x1c8b   :  { %v1426_v39 = vadd.f32 %v1425_v34, %v1393_v38  ;;  %1484 = vrot.lane.b32.xlu0 %v1393_v38, %s2434_s27 }
0x1c8d   :  { %2260 = vtanh.f32 %v1426_v39 }
0x1c90   :  { %v1394_v40 = vpop.f32.mrf.mxu3 }
0x1c93   :  { %v2261_v41 = vpop.eup %2260  ;;  %1503 = vrot.lane.b32.xlu0 %v1359_v30, %s2434_s27 }
0x1c94   :  { %v1430_v42 = vpack.c.bf16 %v2261_v41, %v2261_v41 }
0x1c96   :  { %2053 = vmatmul.msk.bf16.vlgmr.msra.gmra.mxu1 %vm168_vm0, %v1430_v42 }
0x1cfd   :  { %v1485_v57 = vpop.permute.xlu0 %1484 }
0x1d05   :  { %v1504_v8 = vpop.permute.xlu0 %1503 }
0x1d13   :  { %v1459_v43 = vpop.f32.mrf.mxu1 }
0x1d14   :  { %v1460_v44 = vadd.f32 %v2646_v22, %v1459_v43 }
0x1d16   :  { %v1463_v45 = vadd.f32 %v1460_v44, %v1393_v38 }
0x1d18   :  { %v2054_v46 = vmul.f32 -1.442695, %v1463_v45 }
0x1d1a   :  { %2262 = vpow2.f32 %v2054_v46 }
0x1d1b   :  { %v1461_v47 = vpop.f32.mrf.mxu1 }
0x1d20   :  { %v2263_v48 = vpop.eup %2262 }
0x1d21   :  { %v1467_v49 = vadd.f32 1.0, %v2263_v48 }
0x1d23   :  { %2264 = vrcp.f32 %v1467_v49  ;;  %v1479_v1 = vand.u32 2147483648, %v1467_v49  ;;  %v1477_v54 = vand.u32 2147483647, %v1467_v49  ;;  %vm1473_vm9 = vweird.f32 %v1467_v49 }
0x1d25   :  { %v1480_v55 = vor.u32 1.1754944e-38, %v1479_v1  ;;  %vm1478_vm11 = vcmp.eq.f32.partialorder %v1477_v54, 8.507059e+37  ;;  %v2157_v54 = vld [vmem:[#allocation10] sm:$0xff] }
0x1d29   :  { %v2265_v50 = vpop.eup %2264 }
0x1d2a   :  { %v1469_v51 = vmul.f32 %v2265_v50, %v1467_v49  ;;  %vm1474_vm8 = vweird.f32 %v2265_v50 }
0x1d2b   :  { %vm1475_vm10 = vmor %vm1473_vm9, %vm1474_vm8 }
0x1d2c   :  { %v1470_v52 = vsub.f32 1.0, %v1469_v51 }
0x1d2e   :  { %v1471_v53 = vmul.f32 %v2265_v50, %v1470_v52 }
0x1d30   :  { %v1472_v4 = vadd.f32 %v2265_v50, %v1471_v53  ;;  %v2158_v53 = vld [vmem:[#allocation10 + $0x8] sm:$0xff] }
0x1d31   :  { %1713 = vmatpush.bf16.msrb.mxu1 %v2158_v53 }
0x1d32   :  { %v1476_v56 = vsel %vm1475_vm10, %v2265_v50, %v1472_v4 }
0x1d33   :  { %v1481_v58 = vsel %vm1478_vm11, %v1480_v55, %v1476_v56 }
0x1d34   :  { %v1487_v59 = vmul.f32 %v1485_v57, %v1481_v58  ;;  %v1494_v2 = vsub.f32 1.0, %v1481_v58  ;;  %v1500_v5 = vmul.f32 %v1481_v58, %v2727_v18 }
0x1d35   :  { %1714 = vmatpush.bf16.msrb.mxu1 %v2157_v54 }
0x1d36   :  { %1489 = vrot.lane.b32.xlu1 %v1487_v59, %s2434_s27 }
0x1da8   :  { %v1490_v60 = vpop.permute.xlu1 %1489 }
0x1da9   :  { %v1492_v61 = vadd.f32 %v1490_v60, %v1460_v44 }
0x1dab   :  { %2266 = vtanh.f32 %v1492_v61 }
0x1db1   :  { %v2267_v62 = vpop.eup %2266 }
0x1db2   :  { %1496 = vrot.lane.b32.xlu2 %v2267_v62, %s2437_s4  ;;  %v2160_v62 = vld [vmem:[%s2812_s8 + $0x8] sm:$0xff]  ;;  %s2440_s8 = smov [#allocation13]  }
0x1db3   :  { %1746 = vmatpush.bf16.msrb.mxu2 %v2160_v62  ;;  %s1842_s26 = sshll.u32 %s2440_s8, 4  ;;  %s1843_s26 = int_to_ptr.vmem [resolvable:$true] %s1842_s26 }
0x1db7   :  { %1747 = vmatpush.bf16.msrb.mxu2 %v2159_v63 }
0x1e0c   :  { %v1497_v3 = vpop.permute.xlu2 %1496 }
0x1e0d   :  { %v1499_v6 = vmul.f32 %v1497_v3, %v1494_v2  ;;  %v1681_v2 = vstv %s1680_s5  ;;  %v1679_v3 = vld [vmem:[#allocation7 + $0x30] sm:$0xff] }
0x1e0e   :  { %vm1682_vm2 = vcmp.eq.s32.totalorder %v1681_v2, 1 }
0x1e0f   :  { %v2748_v7 = vadd.f32 %v1500_v5, %v1499_v6 }
0x1e11   :  { %v1522_v9 = vpack.c.bf16 %v2748_v7, %v2748_v7  ;;  %v1506_v10 = vadd.f32 %v1504_v8, %v2748_v7 }
0x1e13   :  { %1528 = vrot.lane.b32.xlu2 %v1522_v9, %s2434_s27  ;;  %1508 = vrot.lane.b32.xlu1 %v1506_v10, %s2434_s27  ;;  %v2162_v9 = vld [vmem:[#allocation11 + $0x8] sm:$0xff] }
0x1e14   :  { %1780 = vmatpush.bf16.msrb.mxu3 %v2162_v9 }
0x1e6d   :  { %v1529_v13 = vpop.permute.xlu2 %1528 }
0x1e6e   :  { %2064 = vmatmul.msk.bf16.vlgmr.msra.gmra.mxu2 %vm168_vm0, %v1529_v13  ;;  %v2161_v13 = vld [vmem:[#allocation11] sm:$0xff] }
0x1e6f   :  { %1781 = vmatpush.bf16.msrb.mxu3 %v2161_v13 }
0x1e85   :  { %v1509_v17 = vpop.permute.xlu1 %1508 }
0x1e86   :  { %v1511_v18 = vsel %vm168_vm0, %v1509_v17, 0.0  ;;  %v1521_v19 = vsel %vm1520_vm12, %v1517_v16, %v1509_v17 }
0x1e87   :  { %1513 = vst [vmem:[#allocation13 + $0x28] sm:$0xff] %v1511_v18  ;;  %v1558_v20 = vpack.c.bf16 %v1521_v19, %v1521_v19 }
0x1e89   :  { %2073 = vmatmul.msk.bf16.vlgmr.msra.gmra.mxu3 %vm168_vm0, %v1558_v20 }
0x1ef1   :  { %v1554_v23 = vpop.f32.mrf.mxu2 }
0x1ef2   :  { %v1555_v24 = vadd.f32 %v2638_v15, %v1554_v23 }
0x1ef4   :  { %1646 = vrot.lane.b32.xlu0 %v1555_v24, %s2434_s27 }
0x1ef9   :  { %v1556_v26 = vpop.f32.mrf.mxu2 }
0x1efc   :  { %1665 = vrot.lane.b32.xlu0 %v1521_v19, %s2434_s27 }
0x1f0c   :  { %v1587_v27 = vpop.f32.mrf.mxu3 }
0x1f0d   :  { %v1588_v28 = vadd.f32 %v1587_v27, %v1555_v24 }
0x1f0f   :  { %2268 = vtanh.f32 %v1588_v28 }
0x1f14   :  { %v1589_v29 = vpop.f32.mrf.mxu3 }
0x1f15   :  { %v2269_v30 = vpop.eup %2268 }
0x1f16   :  { %v1592_v31 = vpack.c.bf16 %v2269_v30, %v2269_v30 }
0x1f18   :  { %2082 = vmatmul.msk.bf16.vlgmr.msra.gmra.mxu0 %vm168_vm0, %v1592_v31 }
0x1f66   :  { %v1647_v48 = vpop.permute.xlu0 %1646 }
0x1f6e   :  { %v1666_v59 = vpop.permute.xlu0 %1665 }
0x1f95   :  { %v1621_v32 = vpop.f32.mrf.mxu0 }
0x1f96   :  { %v1622_v33 = vadd.f32 %v2646_v22, %v1621_v32 }
0x1f98   :  { %v1625_v34 = vadd.f32 %v1622_v33, %v1555_v24 }
0x1f9a   :  { %v2083_v35 = vmul.f32 -1.442695, %v1625_v34 }
0x1f9c   :  { %2270 = vpow2.f32 %v2083_v35 }
0x1f9d   :  { %v1623_v36 = vpop.f32.mrf.mxu0 }
0x1fa2   :  { %v2271_v37 = vpop.eup %2270 }
0x1fa3   :  { %v1629_v38 = vadd.f32 1.0, %v2271_v37 }
0x1fa5   :  { %2272 = vrcp.f32 %v1629_v38  ;;  %v1641_v42 = vand.u32 2147483648, %v1629_v38  ;;  %v1639_v44 = vand.u32 2147483647, %v1629_v38  ;;  %vm1635_vm14 = vweird.f32 %v1629_v38 }
0x1fa7   :  { %v1642_v46 = vor.u32 1.1754944e-38, %v1641_v42  ;;  %vm1640_vm1 = vcmp.eq.f32.partialorder %v1639_v44, 8.507059e+37 }
0x1fab   :  { %v2273_v39 = vpop.eup %2272 }
0x1fac   :  { %v1631_v40 = vmul.f32 %v2273_v39, %v1629_v38  ;;  %vm1636_vm13 = vweird.f32 %v2273_v39 }
0x1fad   :  { %vm1637_vm15 = vmor %vm1635_vm14, %vm1636_vm13 }
0x1fae   :  { %v1632_v41 = vsub.f32 1.0, %v1631_v40 }
0x1fb0   :  { %v1633_v43 = vmul.f32 %v2273_v39, %v1632_v41 }
0x1fb2   :  { %v1634_v45 = vadd.f32 %v2273_v39, %v1633_v43 }
0x1fb4   :  { %v1638_v47 = vsel %vm1637_vm15, %v2273_v39, %v1634_v45 }
0x1fb5   :  { %v1643_v49 = vsel %vm1640_vm1, %v1642_v46, %v1638_v47 }
0x1fb6   :  { %v1649_v50 = vmul.f32 %v1647_v48, %v1643_v49  ;;  %v1656_v4 = vsub.f32 1.0, %v1643_v49  ;;  %v1662_v56 = vmul.f32 %v1643_v49, %v2748_v7  ;;  %v2439_v48 = vmov 0.0  }
0x1fb7   :  { %697 = vst [vmem:[#allocation13] sm:$0xff] %v2439_v48 }
0x1fb8   :  { %1651 = vrot.lane.b32.xlu1 %v1649_v50, %s2434_s27 }
0x202a   :  { %v1652_v51 = vpop.permute.xlu1 %1651 }
0x202b   :  { %v1654_v52 = vadd.f32 %v1652_v51, %v1622_v33 }
0x202d   :  { %2274 = vtanh.f32 %v1654_v52 }
0x2033   :  { %v2275_v1 = vpop.eup %2274 }
0x2034   :  { %1658 = vrot.lane.b32.xlu2 %v2275_v1, %s2437_s4 }
0x208e   :  { %v1659_v55 = vpop.permute.xlu2 %1658 }
0x208f   :  { %v1661_v57 = vmul.f32 %v1659_v55, %v1656_v4 }
0x2091   :  { %v2772_v58 = vadd.f32 %v1662_v56, %v1661_v57 }
0x2093   :  { %v1684_v60 = vpack.c.bf16 %v2772_v58, %v2772_v58  ;;  %v1668_v61 = vadd.f32 %v1666_v59, %v2772_v58 }
0x2095   :  { %1690 = vrot.lane.b32.xlu2 %v1684_v60, %s2434_s27  ;;  %1670 = vrot.lane.b32.xlu1 %v1668_v61, %s2434_s27 }
0x20ef   :  { %v1691_v0 = vpop.permute.xlu2 %1690 }
0x20f0   :  { %2093 = vmatmul.msk.bf16.vlgmr.msrb.gmra.mxu1 %vm168_vm0, %v1691_v0 }
0x2107   :  { %v1671_v5 = vpop.permute.xlu1 %1670 }
0x2108   :  { %v1673_v6 = vsel %vm168_vm0, %v1671_v5, 0.0  ;;  %v1683_v7 = vsel %vm1682_vm2, %v1679_v3, %v1671_v5 }
0x2109   :  { %1675 = vst [vmem:[#allocation13 + $0x30] sm:$0xff] %v1673_v6  ;;  %v1720_v8 = vpack.c.bf16 %v1683_v7, %v1683_v7 }
0x210b   :  { %2102 = vmatmul.msk.bf16.vlgmr.msrb.gmra.mxu2 %vm168_vm0, %v1720_v8 }
0x216d   :  { %v1716_v10 = vpop.f32.mrf.mxu1 }
0x216e   :  { %v1717_v11 = vadd.f32 %v2638_v15, %v1716_v10 }
0x2170   :  { %1808 = vrot.lane.b32.xlu0 %v1717_v11, %s2434_s27 }
0x2175   :  { %v1718_v12 = vpop.f32.mrf.mxu1 }
0x2178   :  { %1827 = vrot.lane.b32.xlu0 %v1683_v7, %s2434_s27 }
0x218e   :  { %v1749_v14 = vpop.f32.mrf.mxu2 }
0x218f   :  { %v1750_v16 = vadd.f32 %v1749_v14, %v1717_v11 }
0x2191   :  { %2276 = vtanh.f32 %v1750_v16 }
0x2196   :  { %v1751_v17 = vpop.f32.mrf.mxu2 }
0x2197   :  { %v2277_v18 = vpop.eup %2276 }
0x2198   :  { %v1754_v19 = vpack.c.bf16 %v2277_v18, %v2277_v18 }
0x219a   :  { %2111 = vmatmul.msk.bf16.vlgmr.msrb.gmra.mxu3 %vm168_vm0, %v1754_v19 }
0x221d   :  { %v1783_v20 = vpop.f32.mrf.mxu3 }
0x221e   :  { %v1784_v21 = vadd.f32 %v2646_v22, %v1783_v20  ;;  %v1809_v22 = vpop.permute.xlu0 %1808 }
0x2220   :  { %v1787_v23 = vadd.f32 %v1784_v21, %v1717_v11 }
0x2222   :  { %v2112_v15 = vmul.f32 -1.442695, %v1787_v23 }
0x2224   :  { %2278 = vpow2.f32 %v2112_v15 }
0x2225   :  { %v1785_v24 = vpop.f32.mrf.mxu3 }
0x2226   :  { %v1828_v46 = vpop.permute.xlu0 %1827 }
0x222a   :  { %v2279_v25 = vpop.eup %2278 }
0x222b   :  { %v1791_v26 = vadd.f32 1.0, %v2279_v25 }
0x222d   :  { %2280 = vrcp.f32 %v1791_v26  ;;  %v1803_v30 = vand.u32 2147483648, %v1791_v26  ;;  %v1801_v32 = vand.u32 2147483647, %v1791_v26  ;;  %vm1797_vm4 = vweird.f32 %v1791_v26 }
0x222f   :  { %v1804_v34 = vor.u32 1.1754944e-38, %v1803_v30  ;;  %vm1802_vm6 = vcmp.eq.f32.partialorder %v1801_v32, 8.507059e+37 }
0x2233   :  { %v2281_v27 = vpop.eup %2280 }
0x2234   :  { %v1793_v28 = vmul.f32 %v2281_v27, %v1791_v26  ;;  %vm1798_vm3 = vweird.f32 %v2281_v27 }
0x2235   :  { %vm1799_vm5 = vmor %vm1797_vm4, %vm1798_vm3 }
0x2236   :  { %v1794_v29 = vsub.f32 1.0, %v1793_v28 }
0x2238   :  { %v1795_v31 = vmul.f32 %v2281_v27, %v1794_v29 }
0x223a   :  { %v1796_v33 = vadd.f32 %v2281_v27, %v1795_v31 }
0x223c   :  { %v1800_v35 = vsel %vm1799_vm5, %v2281_v27, %v1796_v33 }
0x223d   :  { %v1805_v36 = vsel %vm1802_vm6, %v1804_v34, %v1800_v35 }
0x223e   :  { %v1811_v37 = vmul.f32 %v1809_v22, %v1805_v36  ;;  %v1818_v41 = vsub.f32 1.0, %v1805_v36  ;;  %v1824_v43 = vmul.f32 %v1805_v36, %v2772_v58 }
0x2240   :  { %1813 = vrot.lane.b32.xlu1 %v1811_v37, %s2434_s27 }
0x22b2   :  { %v1814_v38 = vpop.permute.xlu1 %1813 }
0x22b3   :  { %v1816_v39 = vadd.f32 %v1814_v38, %v1784_v21 }
0x22b5   :  { %2282 = vtanh.f32 %v1816_v39 }
0x22bb   :  { %v2283_v40 = vpop.eup %2282 }
0x22bc   :  { %1820 = vrot.lane.b32.xlu2 %v2283_v40, %s2437_s4 }
0x2316   :  { %v1821_v42 = vpop.permute.xlu2 %1820 }
0x2317   :  { %v1823_v44 = vmul.f32 %v1821_v42, %v1818_v41 }
0x2319   :  { %v1825_v45 = vadd.f32 %v1824_v43, %v1823_v44 }
0x231b   :  { %v1830_v47 = vadd.f32 %v1828_v46, %v1825_v45 }
0x231d   :  { %1832 = vrot.lane.b32.xlu1 %v1830_v47, %s2434_s27 }
0x238f   :  { %v1833_v49 = vpop.permute.xlu1 %1832 }
0x2390   :  { %v1835_v50 = vsel %vm168_vm0, %v1833_v49, 0.0 }
0x2391   :  { %1837 = vst [vmem:[#allocation13 + $0x38] sm:$0xff] %v1835_v50 }
0x2392   :  { %1850 = dma.vmem_to_hbm [thread:$0]  %s1843_s26, 1024, %s1845_s3, [#allocation5], %s2429_s16, %s2429_s16, %s2430_s17  }
0x2393   :  { %2426 = dma.done.wait [#allocation5], 1024  }
0x2394   :  { %2427 = vsyncadd [#allocation5], 4294966272 }
0x2395   :  { %1855 = vsyncpa [#allocation4], 1 }
0x2396   :  { %1856 = vsyncpa [#allocation8], 1 }
0x2397   :  { %1857 = vsyncpa [#allocation12], 1 }
0x2398   :  { %1858 = vsyncpa [#allocation5], 1 }
0x2399   :  { %1859 = vsyncpa [#allocation6], 1 }

</bundles_post_ra>
